<compile_context>
chip_gen: v6e
topology: v6e:2x2x1
jax: 0.10.0
libtpu: 0.0.40
codegen_flags: <defaults>
</compile_context>

<pallas_src>
import functools
import math

import jax
import jax.numpy as jnp
from jax import lax
from jax.experimental import pallas as pl
from jax.experimental.pallas import tpu as pltpu


# ----------------------------- Pallas kernel ------------------------------- #
def _soen_kernel(xs0_ref, params_ref, J_ref, out_ref, *, num_steps):
    # Loop-invariant loads / precompute (hoisted out of the serial recurrence).
    x0 = xs0_ref[...]                                   # (Bt, Np) zeros + x pinned
    J = J_ref[...]                                      # (Np, Np) masked, padded
    params = params_ref[...]                            # (8, Np)  packed rows
    flux = params[0:1, :]                               # (1, Np)  flux_offset
    a = params[1:2, :]                                  # (1, Np)  1 - dt/tau
    b = params[2:3, :]                                  # (1, Np)  dt * gamma
    pin = jnp.broadcast_to(params[3:4, :] != 0.0, x0.shape)   # (Bt, Np) bool
    two_pi = jnp.float32(2.0 * math.pi)

    def step(_, s):
        # calculate_phi: phi = s @ J_masked + flux_offset (+ external_flux = 0)
        phi = jnp.dot(s, J, preferred_element_type=jnp.float32) + flux
        phi = jnp.clip(phi, -0.5, 0.5)                  # clip_phi
        phi = phi - jnp.round(phi)                      # make_periodic wrap
        g = jnp.tanh(two_pi * phi) * (1.0 - s)          # tanh_2d(phi, s)
        # update_state with dt folded:  s + dt*(gamma*g - s/tau) = s*a + b*g
        s_new = jnp.clip(s * a + b * g, 0.0, 1.0)       # clip_state
        # re-pin input nodes (input_type == 'state', non-time-varying)
        return jnp.where(pin, x0, s_new)

    out_ref[...] = lax.fori_loop(0, num_steps, step, x0, unroll=True)


# ------------------------------- wrapper ------------------------------------ #
def soen_forward(x, J_masked, flux_offset, gamma, tau, *,
                 num_input, num_output, dt, max_iter):
    """Parameter plumbing / padding in plain JAX; dynamics loop in the kernel."""
    B = x.shape[0]
    N = J_masked.shape[0]
    x = x.astype(jnp.float32)
    dt = jnp.float32(dt)

    # Pad nodes to a multiple of 128 lanes.  Batch tile: multiple of 8
    # sublanes, growing with batch size (capped at 256) so large batches issue
    # large MXU matmuls and few grid steps; grid stays batch-parallel.
    Np = int(pl.cdiv(N, 128)) * 128
    B8 = int(pl.cdiv(max(B, 1), 8)) * 8
    B_TILE = min(256, B8)
    Bp = int(pl.cdiv(B8, B_TILE)) * B_TILE

    # Padded, masked weights (pad rows/cols are zero -> pad nodes inert).
    J_pad = jnp.zeros((Np, Np), jnp.float32).at[:N, :N].set(
        J_masked.astype(jnp.float32))

    # Packed per-node params block (8 sublanes x Np lanes):
    #   row 0: flux_offset, row 1: a = 1 - dt/tau, row 2: b = dt*gamma,
    #   row 3: input-node pin mask, rows 4..7: zero padding.
    params = jnp.zeros((8, Np), jnp.float32)
    params = params.at[0, :N].set(flux_offset.astype(jnp.float32))
    params = params.at[1, :].set(1.0)                      # pads: a=1
    params = params.at[1, :N].set(1.0 - dt / tau.astype(jnp.float32))
    params = params.at[2, :N].set(dt * gamma.astype(jnp.float32))
    params = params.at[3, :num_input].set(1.0)

    # Initial state == zeros with input pinned == "x_full" (merged operand).
    xs0 = jnp.zeros((Bp, Np), jnp.float32).at[:B, :num_input].set(x)

    kern = functools.partial(_soen_kernel, num_steps=int(max_iter) - 1)

    s_final = pl.pallas_call(
        kern,
        out_shape=jax.ShapeDtypeStruct((Bp, Np), jnp.float32),
        grid=(Bp // B_TILE,),
        in_specs=[
            pl.BlockSpec((B_TILE, Np), lambda i: (i, 0)),   # xs0 (state/input)
            pl.BlockSpec((8, Np), lambda i: (0, 0)),        # packed params
            pl.BlockSpec((Np, Np), lambda i: (0, 0)),       # masked J
        ],
        out_specs=pl.BlockSpec((B_TILE, Np), lambda i: (i, 0)),
        compiler_params=pltpu.CompilerParams(
            dimension_semantics=("parallel",)),
    )(xs0, params, J_pad)

    return s_final[:B, N - num_output:N]


# -------------------------- pure-JAX reference ------------------------------ #
def soen_forward_ref(x, J_masked, flux_offset, gamma, tau, *,
                     num_input, num_output, dt, max_iter):
    B = x.shape[0]
    N = J_masked.shape[0]
    s = jnp.zeros((B, N), jnp.float32).at[:, :num_input].set(x)
    for _ in range(int(max_iter) - 1):
        phi = s @ J_masked + flux_offset[None, :]
        phi = jnp.clip(phi, -0.5, 0.5)
        phi = phi - jnp.round(phi)
        g = jnp.tanh(2.0 * jnp.pi * phi) * (1.0 - s)
        s = jnp.clip(s + dt * (gamma[None, :] * g - s / tau[None, :]), 0.0, 1.0)
        s = s.at[:, :num_input].set(x)
    return s[:, -num_output:]


# --------------------------------- main ------------------------------------- #
if __name__ == "__main__":
    # Small, SOENModel-consistent sizes.
    num_input, num_hidden, num_output = 8, 16, 8
    N = num_input + num_hidden + num_output          # num_total = 32
    B = 4
    dt, max_iter = 0.1, 20

    key = jax.random.PRNGKey(0)
    k_mask_ih, k_mask_ho, k_mask_hh, k_J, k_gamma, k_tau, k_x = \
        jax.random.split(key, 7)

    # Connection mask (Bernoulli block structure, no self-connections),
    # stored in the s@J convention: mask[pre, post].
    mask = jnp.zeros((N, N), jnp.float32)
    ih = jax.random.bernoulli(k_mask_ih, 0.7, (num_input, num_hidden))
    ho = jax.random.bernoulli(k_mask_ho, 0.7, (num_hidden, num_output))
    hh = jax.random.bernoulli(k_mask_hh, 0.3, (num_hidden, num_hidden))
    mask = mask.at[:num_input, num_input:num_input + num_hidden].set(ih)
    mask = mask.at[num_input:num_input + num_hidden,
                   num_input + num_hidden:].set(ho)
    mask = mask.at[num_input:num_input + num_hidden,
                   num_input:num_input + num_hidden].set(hh)
    mask = mask * (1.0 - jnp.eye(N, dtype=jnp.float32))   # no self-connections

    # Parameters (weight_init_method='normal', init_scale=0.1;
    # gamma/tau ~ |Normal| with non-negativity constraints; flux_offset = 0).
    J = jax.random.normal(k_J, (N, N), jnp.float32) * 0.1
    J_masked = J * mask
    gamma = jnp.clip(jnp.abs(1.0 + 0.1 * jax.random.normal(k_gamma, (N,))),
                     0.0, 10.0).astype(jnp.float32)
    tau = jnp.clip(jnp.abs(1.0 + 0.1 * jax.random.normal(k_tau, (N,))),
                   1e-4, 10.0).astype(jnp.float32)
    flux_offset = jnp.zeros((N,), jnp.float32)

    # Non-time-varying 'state' input: (batch, num_input) in [0, 1].
    x = jax.random.uniform(k_x, (B, num_input), jnp.float32)

    out = soen_forward(x, J_masked, flux_offset, gamma, tau,
                       num_input=num_input, num_output=num_output,
                       dt=dt, max_iter=max_iter)
    out = jax.block_until_ready(out)

    ref = soen_forward_ref(x, J_masked, flux_offset, gamma, tau,
                           num_input=num_input, num_output=num_output,
                           dt=dt, max_iter=max_iter)

    assert out.shape == (B, num_output)
    assert jnp.allclose(out, ref, atol=1e-5, rtol=1e-5), \
        f"mismatch: max abs err {jnp.max(jnp.abs(out - ref))}"
    print("KERNEL_OK")
</pallas_src>

<mosaic_0001>
module attributes {stable_mosaic.version = 11 : i64} {
  func.func @_soen_kernel(%arg0: i32, %arg1: memref<8x128xf32, #tpu.memory_space<vmem>>, %arg2: memref<8x128xf32, #tpu.memory_space<vmem>>, %arg3: memref<128x128xf32, #tpu.memory_space<vmem>>, %arg4: memref<8x128xf32, #tpu.memory_space<vmem>>) attributes {dimension_semantics = [#tpu.dimension_semantics<parallel>], iteration_bounds = array<i64: 1>, scalar_prefetch = 0 : i64, scratch_operands = 0 : i64, tpu.core_type = #tpu.core_type<tc>, window_params = [{transform_indices = @transform_0, window_bounds = array<i64: 8, 128>}, {pipeline_mode = #tpu.pipeline_mode<synchronous>, transform_indices = @transform_1, window_bounds = array<i64: 8, 128>}, {pipeline_mode = #tpu.pipeline_mode<synchronous>, transform_indices = @transform_2, window_bounds = array<i64: 128, 128>}, {transform_indices = @transform_3, window_bounds = array<i64: 8, 128>}]} {
    %c0 = arith.constant 0 : index
    %c0_0 = arith.constant 0 : index
    %0 = vector.load %arg1[%c0, %c0_0] : memref<8x128xf32, #tpu.memory_space<vmem>>, vector<8x128xf32>
    %c0_1 = arith.constant 0 : index
    %c0_2 = arith.constant 0 : index
    %1 = vector.load %arg3[%c0_1, %c0_2] : memref<128x128xf32, #tpu.memory_space<vmem>>, vector<128x128xf32>
    %c0_3 = arith.constant 0 : index
    %c0_4 = arith.constant 0 : index
    %2 = vector.load %arg2[%c0_3, %c0_4] : memref<8x128xf32, #tpu.memory_space<vmem>>, vector<8x128xf32>
    %3 = vector.extract_strided_slice %2 {offsets = [0, 0], sizes = [1, 128], strides = [1, 1]} : vector<8x128xf32> to vector<1x128xf32>
    %4 = vector.extract_strided_slice %2 {offsets = [1, 0], sizes = [1, 128], strides = [1, 1]} : vector<8x128xf32> to vector<1x128xf32>
    %5 = vector.extract_strided_slice %2 {offsets = [2, 0], sizes = [1, 128], strides = [1, 1]} : vector<8x128xf32> to vector<1x128xf32>
    %6 = vector.extract_strided_slice %2 {offsets = [3, 0], sizes = [1, 128], strides = [1, 1]} : vector<8x128xf32> to vector<1x128xf32>
    %cst = arith.constant 0.000000e+00 : f32
    %7 = vector.broadcast %cst : f32 to vector<1x128xf32>
    %8 = arith.cmpf one, %6, %7 : vector<1x128xf32>
    %9 = vector.shape_cast %8 : vector<1x128xi1> to vector<1x128xi1>
    %10 = vector.broadcast %9 : vector<1x128xi1> to vector<8x128xi1>
    %cst_5 = arith.constant 6.28318548 : f32
    %c0_i32 = arith.constant 0 : i32
    %cst_6 = arith.constant dense<0.000000e+00> : vector<8x128xf32>
    %11 = tpu.matmul %0, %1, %cst_6 {dimension_numbers = #tpu.dot_dimension_numbers<[1], [0], [0], [1], [0, 0, 1, 1], [], []>} : vector<8x128xf32>, vector<128x128xf32>, vector<8x128xf32> -> vector<8x128xf32>
    %12 = vector.broadcast %3 : vector<1x128xf32> to vector<8x128xf32>
    %13 = arith.addf %11, %12 : vector<8x128xf32>
    %cst_7 = arith.constant -5.000000e-01 : f32
    %cst_8 = arith.constant 5.000000e-01 : f32
    %14 = vector.broadcast %cst_7 : f32 to vector<8x128xf32>
    %15 = arith.maximumf %14, %13 : vector<8x128xf32>
    %16 = vector.broadcast %cst_8 : f32 to vector<8x128xf32>
    %17 = arith.minimumf %16, %15 : vector<8x128xf32>
    %18 = math.roundeven %17 : vector<8x128xf32>
    %19 = arith.subf %17, %18 : vector<8x128xf32>
    %20 = vector.broadcast %cst_5 : f32 to vector<8x128xf32>
    %21 = arith.mulf %20, %19 : vector<8x128xf32>
    %22 = math.tanh %21 : vector<8x128xf32>
    %cst_9 = arith.constant 1.000000e+00 : f32
    %23 = vector.broadcast %cst_9 : f32 to vector<8x128xf32>
    %24 = arith.subf %23, %0 : vector<8x128xf32>
    %25 = arith.mulf %22, %24 : vector<8x128xf32>
    %26 = vector.broadcast %4 : vector<1x128xf32> to vector<8x128xf32>
    %27 = arith.mulf %0, %26 : vector<8x128xf32>
    %28 = vector.broadcast %5 : vector<1x128xf32> to vector<8x128xf32>
    %29 = arith.mulf %28, %25 : vector<8x128xf32>
    %30 = arith.addf %27, %29 : vector<8x128xf32>
    %cst_10 = arith.constant 0.000000e+00 : f32
    %cst_11 = arith.constant 1.000000e+00 : f32
    %31 = vector.broadcast %cst_10 : f32 to vector<8x128xf32>
    %32 = arith.maximumf %31, %30 : vector<8x128xf32>
    %33 = vector.broadcast %cst_11 : f32 to vector<8x128xf32>
    %34 = arith.minimumf %33, %32 : vector<8x128xf32>
    %35 = arith.select %10, %0, %34 : vector<8x128xi1>, vector<8x128xf32>
    %c1_i32 = arith.constant 1 : i32
    %cst_12 = arith.constant dense<0.000000e+00> : vector<8x128xf32>
    %36 = tpu.matmul %35, %1, %cst_12 {dimension_numbers = #tpu.dot_dimension_numbers<[1], [0], [0], [1], [0, 0, 1, 1], [], []>} : vector<8x128xf32>, vector<128x128xf32>, vector<8x128xf32> -> vector<8x128xf32>
    %37 = vector.broadcast %3 : vector<1x128xf32> to vector<8x128xf32>
    %38 = arith.addf %36, %37 : vector<8x128xf32>
    %cst_13 = arith.constant -5.000000e-01 : f32
    %cst_14 = arith.constant 5.000000e-01 : f32
    %39 = vector.broadcast %cst_13 : f32 to vector<8x128xf32>
    %40 = arith.maximumf %39, %38 : vector<8x128xf32>
    %41 = vector.broadcast %cst_14 : f32 to vector<8x128xf32>
    %42 = arith.minimumf %41, %40 : vector<8x128xf32>
    %43 = math.roundeven %42 : vector<8x128xf32>
    %44 = arith.subf %42, %43 : vector<8x128xf32>
    %45 = vector.broadcast %cst_5 : f32 to vector<8x128xf32>
    %46 = arith.mulf %45, %44 : vector<8x128xf32>
    %47 = math.tanh %46 : vector<8x128xf32>
    %cst_15 = arith.constant 1.000000e+00 : f32
    %48 = vector.broadcast %cst_15 : f32 to vector<8x128xf32>
    %49 = arith.subf %48, %35 : vector<8x128xf32>
    %50 = arith.mulf %47, %49 : vector<8x128xf32>
    %51 = vector.broadcast %4 : vector<1x128xf32> to vector<8x128xf32>
    %52 = arith.mulf %35, %51 : vector<8x128xf32>
    %53 = vector.broadcast %5 : vector<1x128xf32> to vector<8x128xf32>
    %54 = arith.mulf %53, %50 : vector<8x128xf32>
    %55 = arith.addf %52, %54 : vector<8x128xf32>
    %cst_16 = arith.constant 0.000000e+00 : f32
    %cst_17 = arith.constant 1.000000e+00 : f32
    %56 = vector.broadcast %cst_16 : f32 to vector<8x128xf32>
    %57 = arith.maximumf %56, %55 : vector<8x128xf32>
    %58 = vector.broadcast %cst_17 : f32 to vector<8x128xf32>
    %59 = arith.minimumf %58, %57 : vector<8x128xf32>
    %60 = arith.select %10, %0, %59 : vector<8x128xi1>, vector<8x128xf32>
    %c2_i32 = arith.constant 2 : i32
    %cst_18 = arith.constant dense<0.000000e+00> : vector<8x128xf32>
    %61 = tpu.matmul %60, %1, %cst_18 {dimension_numbers = #tpu.dot_dimension_numbers<[1], [0], [0], [1], [0, 0, 1, 1], [], []>} : vector<8x128xf32>, vector<128x128xf32>, vector<8x128xf32> -> vector<8x128xf32>
    %62 = vector.broadcast %3 : vector<1x128xf32> to vector<8x128xf32>
    %63 = arith.addf %61, %62 : vector<8x128xf32>
    %cst_19 = arith.constant -5.000000e-01 : f32
    %cst_20 = arith.constant 5.000000e-01 : f32
    %64 = vector.broadcast %cst_19 : f32 to vector<8x128xf32>
    %65 = arith.maximumf %64, %63 : vector<8x128xf32>
    %66 = vector.broadcast %cst_20 : f32 to vector<8x128xf32>
    %67 = arith.minimumf %66, %65 : vector<8x128xf32>
    %68 = math.roundeven %67 : vector<8x128xf32>
    %69 = arith.subf %67, %68 : vector<8x128xf32>
    %70 = vector.broadcast %cst_5 : f32 to vector<8x128xf32>
    %71 = arith.mulf %70, %69 : vector<8x128xf32>
    %72 = math.tanh %71 : vector<8x128xf32>
    %cst_21 = arith.constant 1.000000e+00 : f32
    %73 = vector.broadcast %cst_21 : f32 to vector<8x128xf32>
    %74 = arith.subf %73, %60 : vector<8x128xf32>
    %75 = arith.mulf %72, %74 : vector<8x128xf32>
    %76 = vector.broadcast %4 : vector<1x128xf32> to vector<8x128xf32>
    %77 = arith.mulf %60, %76 : vector<8x128xf32>
    %78 = vector.broadcast %5 : vector<1x128xf32> to vector<8x128xf32>
    %79 = arith.mulf %78, %75 : vector<8x128xf32>
    %80 = arith.addf %77, %79 : vector<8x128xf32>
    %cst_22 = arith.constant 0.000000e+00 : f32
    %cst_23 = arith.constant 1.000000e+00 : f32
    %81 = vector.broadcast %cst_22 : f32 to vector<8x128xf32>
    %82 = arith.maximumf %81, %80 : vector<8x128xf32>
    %83 = vector.broadcast %cst_23 : f32 to vector<8x128xf32>
    %84 = arith.minimumf %83, %82 : vector<8x128xf32>
    %85 = arith.select %10, %0, %84 : vector<8x128xi1>, vector<8x128xf32>
    %c3_i32 = arith.constant 3 : i32
    %cst_24 = arith.constant dense<0.000000e+00> : vector<8x128xf32>
    %86 = tpu.matmul %85, %1, %cst_24 {dimension_numbers = #tpu.dot_dimension_numbers<[1], [0], [0], [1], [0, 0, 1, 1], [], []>} : vector<8x128xf32>, vector<128x128xf32>, vector<8x128xf32> -> vector<8x128xf32>
    %87 = vector.broadcast %3 : vector<1x128xf32> to vector<8x128xf32>
    %88 = arith.addf %86, %87 : vector<8x128xf32>
    %cst_25 = arith.constant -5.000000e-01 : f32
    %cst_26 = arith.constant 5.000000e-01 : f32
    %89 = vector.broadcast %cst_25 : f32 to vector<8x128xf32>
    %90 = arith.maximumf %89, %88 : vector<8x128xf32>
    %91 = vector.broadcast %cst_26 : f32 to vector<8x128xf32>
    %92 = arith.minimumf %91, %90 : vector<8x128xf32>
    %93 = math.roundeven %92 : vector<8x128xf32>
    %94 = arith.subf %92, %93 : vector<8x128xf32>
    %95 = vector.broadcast %cst_5 : f32 to vector<8x128xf32>
    %96 = arith.mulf %95, %94 : vector<8x128xf32>
    %97 = math.tanh %96 : vector<8x128xf32>
    %cst_27 = arith.constant 1.000000e+00 : f32
    %98 = vector.broadcast %cst_27 : f32 to vector<8x128xf32>
    %99 = arith.subf %98, %85 : vector<8x128xf32>
    %100 = arith.mulf %97, %99 : vector<8x128xf32>
    %101 = vector.broadcast %4 : vector<1x128xf32> to vector<8x128xf32>
    %102 = arith.mulf %85, %101 : vector<8x128xf32>
    %103 = vector.broadcast %5 : vector<1x128xf32> to vector<8x128xf32>
    %104 = arith.mulf %103, %100 : vector<8x128xf32>
    %105 = arith.addf %102, %104 : vector<8x128xf32>
    %cst_28 = arith.constant 0.000000e+00 : f32
    %cst_29 = arith.constant 1.000000e+00 : f32
    %106 = vector.broadcast %cst_28 : f32 to vector<8x128xf32>
    %107 = arith.maximumf %106, %105 : vector<8x128xf32>
    %108 = vector.broadcast %cst_29 : f32 to vector<8x128xf32>
    %109 = arith.minimumf %108, %107 : vector<8x128xf32>
    %110 = arith.select %10, %0, %109 : vector<8x128xi1>, vector<8x128xf32>
    %c4_i32 = arith.constant 4 : i32
    %cst_30 = arith.constant dense<0.000000e+00> : vector<8x128xf32>
    %111 = tpu.matmul %110, %1, %cst_30 {dimension_numbers = #tpu.dot_dimension_numbers<[1], [0], [0], [1], [0, 0, 1, 1], [], []>} : vector<8x128xf32>, vector<128x128xf32>, vector<8x128xf32> -> vector<8x128xf32>
    %112 = vector.broadcast %3 : vector<1x128xf32> to vector<8x128xf32>
    %113 = arith.addf %111, %112 : vector<8x128xf32>
    %cst_31 = arith.constant -5.000000e-01 : f32
    %cst_32 = arith.constant 5.000000e-01 : f32
    %114 = vector.broadcast %cst_31 : f32 to vector<8x128xf32>
    %115 = arith.maximumf %114, %113 : vector<8x128xf32>
    %116 = vector.broadcast %cst_32 : f32 to vector<8x128xf32>
    %117 = arith.minimumf %116, %115 : vector<8x128xf32>
    %118 = math.roundeven %117 : vector<8x128xf32>
    %119 = arith.subf %117, %118 : vector<8x128xf32>
    %120 = vector.broadcast %cst_5 : f32 to vector<8x128xf32>
    %121 = arith.mulf %120, %119 : vector<8x128xf32>
    %122 = math.tanh %121 : vector<8x128xf32>
    %cst_33 = arith.constant 1.000000e+00 : f32
    %123 = vector.broadcast %cst_33 : f32 to vector<8x128xf32>
    %124 = arith.subf %123, %110 : vector<8x128xf32>
    %125 = arith.mulf %122, %124 : vector<8x128xf32>
    %126 = vector.broadcast %4 : vector<1x128xf32> to vector<8x128xf32>
    %127 = arith.mulf %110, %126 : vector<8x128xf32>
    %128 = vector.broadcast %5 : vector<1x128xf32> to vector<8x128xf32>
    %129 = arith.mulf %128, %125 : vector<8x128xf32>
    %130 = arith.addf %127, %129 : vector<8x128xf32>
    %cst_34 = arith.constant 0.000000e+00 : f32
    %cst_35 = arith.constant 1.000000e+00 : f32
    %131 = vector.broadcast %cst_34 : f32 to vector<8x128xf32>
    %132 = arith.maximumf %131, %130 : vector<8x128xf32>
    %133 = vector.broadcast %cst_35 : f32 to vector<8x128xf32>
    %134 = arith.minimumf %133, %132 : vector<8x128xf32>
    %135 = arith.select %10, %0, %134 : vector<8x128xi1>, vector<8x128xf32>
    %c5_i32 = arith.constant 5 : i32
    %cst_36 = arith.constant dense<0.000000e+00> : vector<8x128xf32>
    %136 = tpu.matmul %135, %1, %cst_36 {dimension_numbers = #tpu.dot_dimension_numbers<[1], [0], [0], [1], [0, 0, 1, 1], [], []>} : vector<8x128xf32>, vector<128x128xf32>, vector<8x128xf32> -> vector<8x128xf32>
    %137 = vector.broadcast %3 : vector<1x128xf32> to vector<8x128xf32>
    %138 = arith.addf %136, %137 : vector<8x128xf32>
    %cst_37 = arith.constant -5.000000e-01 : f32
    %cst_38 = arith.constant 5.000000e-01 : f32
    %139 = vector.broadcast %cst_37 : f32 to vector<8x128xf32>
    %140 = arith.maximumf %139, %138 : vector<8x128xf32>
    %141 = vector.broadcast %cst_38 : f32 to vector<8x128xf32>
    %142 = arith.minimumf %141, %140 : vector<8x128xf32>
    %143 = math.roundeven %142 : vector<8x128xf32>
    %144 = arith.subf %142, %143 : vector<8x128xf32>
    %145 = vector.broadcast %cst_5 : f32 to vector<8x128xf32>
    %146 = arith.mulf %145, %144 : vector<8x128xf32>
    %147 = math.tanh %146 : vector<8x128xf32>
    %cst_39 = arith.constant 1.000000e+00 : f32
    %148 = vector.broadcast %cst_39 : f32 to vector<8x128xf32>
    %149 = arith.subf %148, %135 : vector<8x128xf32>
    %150 = arith.mulf %147, %149 : vector<8x128xf32>
    %151 = vector.broadcast %4 : vector<1x128xf32> to vector<8x128xf32>
    %152 = arith.mulf %135, %151 : vector<8x128xf32>
    %153 = vector.broadcast %5 : vector<1x128xf32> to vector<8x128xf32>
    %154 = arith.mulf %153, %150 : vector<8x128xf32>
    %155 = arith.addf %152, %154 : vector<8x128xf32>
    %cst_40 = arith.constant 0.000000e+00 : f32
    %cst_41 = arith.constant 1.000000e+00 : f32
    %156 = vector.broadcast %cst_40 : f32 to vector<8x128xf32>
    %157 = arith.maximumf %156, %155 : vector<8x128xf32>
    %158 = vector.broadcast %cst_41 : f32 to vector<8x128xf32>
    %159 = arith.minimumf %158, %157 : vector<8x128xf32>
    %160 = arith.select %10, %0, %159 : vector<8x128xi1>, vector<8x128xf32>
    %c6_i32 = arith.constant 6 : i32
    %cst_42 = arith.constant dense<0.000000e+00> : vector<8x128xf32>
    %161 = tpu.matmul %160, %1, %cst_42 {dimension_numbers = #tpu.dot_dimension_numbers<[1], [0], [0], [1], [0, 0, 1, 1], [], []>} : vector<8x128xf32>, vector<128x128xf32>, vector<8x128xf32> -> vector<8x128xf32>
    %162 = vector.broadcast %3 : vector<1x128xf32> to vector<8x128xf32>
    %163 = arith.addf %161, %162 : vector<8x128xf32>
    %cst_43 = arith.constant -5.000000e-01 : f32
    %cst_44 = arith.constant 5.000000e-01 : f32
    %164 = vector.broadcast %cst_43 : f32 to vector<8x128xf32>
    %165 = arith.maximumf %164, %163 : vector<8x128xf32>
    %166 = vector.broadcast %cst_44 : f32 to vector<8x128xf32>
    %167 = arith.minimumf %166, %165 : vector<8x128xf32>
    %168 = math.roundeven %167 : vector<8x128xf32>
    %169 = arith.subf %167, %168 : vector<8x128xf32>
    %170 = vector.broadcast %cst_5 : f32 to vector<8x128xf32>
    %171 = arith.mulf %170, %169 : vector<8x128xf32>
    %172 = math.tanh %171 : vector<8x128xf32>
    %cst_45 = arith.constant 1.000000e+00 : f32
    %173 = vector.broadcast %cst_45 : f32 to vector<8x128xf32>
    %174 = arith.subf %173, %160 : vector<8x128xf32>
    %175 = arith.mulf %172, %174 : vector<8x128xf32>
    %176 = vector.broadcast %4 : vector<1x128xf32> to vector<8x128xf32>
    %177 = arith.mulf %160, %176 : vector<8x128xf32>
    %178 = vector.broadcast %5 : vector<1x128xf32> to vector<8x128xf32>
    %179 = arith.mulf %178, %175 : vector<8x128xf32>
    %180 = arith.addf %177, %179 : vector<8x128xf32>
    %cst_46 = arith.constant 0.000000e+00 : f32
    %cst_47 = arith.constant 1.000000e+00 : f32
    %181 = vector.broadcast %cst_46 : f32 to vector<8x128xf32>
    %182 = arith.maximumf %181, %180 : vector<8x128xf32>
    %183 = vector.broadcast %cst_47 : f32 to vector<8x128xf32>
    %184 = arith.minimumf %183, %182 : vector<8x128xf32>
    %185 = arith.select %10, %0, %184 : vector<8x128xi1>, vector<8x128xf32>
    %c7_i32 = arith.constant 7 : i32
    %cst_48 = arith.constant dense<0.000000e+00> : vector<8x128xf32>
    %186 = tpu.matmul %185, %1, %cst_48 {dimension_numbers = #tpu.dot_dimension_numbers<[1], [0], [0], [1], [0, 0, 1, 1], [], []>} : vector<8x128xf32>, vector<128x128xf32>, vector<8x128xf32> -> vector<8x128xf32>
    %187 = vector.broadcast %3 : vector<1x128xf32> to vector<8x128xf32>
    %188 = arith.addf %186, %187 : vector<8x128xf32>
    %cst_49 = arith.constant -5.000000e-01 : f32
    %cst_50 = arith.constant 5.000000e-01 : f32
    %189 = vector.broadcast %cst_49 : f32 to vector<8x128xf32>
    %190 = arith.maximumf %189, %188 : vector<8x128xf32>
    %191 = vector.broadcast %cst_50 : f32 to vector<8x128xf32>
    %192 = arith.minimumf %191, %190 : vector<8x128xf32>
    %193 = math.roundeven %192 : vector<8x128xf32>
    %194 = arith.subf %192, %193 : vector<8x128xf32>
    %195 = vector.broadcast %cst_5 : f32 to vector<8x128xf32>
    %196 = arith.mulf %195, %194 : vector<8x128xf32>
    %197 = math.tanh %196 : vector<8x128xf32>
    %cst_51 = arith.constant 1.000000e+00 : f32
    %198 = vector.broadcast %cst_51 : f32 to vector<8x128xf32>
    %199 = arith.subf %198, %185 : vector<8x128xf32>
    %200 = arith.mulf %197, %199 : vector<8x128xf32>
    %201 = vector.broadcast %4 : vector<1x128xf32> to vector<8x128xf32>
    %202 = arith.mulf %185, %201 : vector<8x128xf32>
    %203 = vector.broadcast %5 : vector<1x128xf32> to vector<8x128xf32>
    %204 = arith.mulf %203, %200 : vector<8x128xf32>
    %205 = arith.addf %202, %204 : vector<8x128xf32>
    %cst_52 = arith.constant 0.000000e+00 : f32
    %cst_53 = arith.constant 1.000000e+00 : f32
    %206 = vector.broadcast %cst_52 : f32 to vector<8x128xf32>
    %207 = arith.maximumf %206, %205 : vector<8x128xf32>
    %208 = vector.broadcast %cst_53 : f32 to vector<8x128xf32>
    %209 = arith.minimumf %208, %207 : vector<8x128xf32>
    %210 = arith.select %10, %0, %209 : vector<8x128xi1>, vector<8x128xf32>
    %c8_i32 = arith.constant 8 : i32
    %cst_54 = arith.constant dense<0.000000e+00> : vector<8x128xf32>
    %211 = tpu.matmul %210, %1, %cst_54 {dimension_numbers = #tpu.dot_dimension_numbers<[1], [0], [0], [1], [0, 0, 1, 1], [], []>} : vector<8x128xf32>, vector<128x128xf32>, vector<8x128xf32> -> vector<8x128xf32>
    %212 = vector.broadcast %3 : vector<1x128xf32> to vector<8x128xf32>
    %213 = arith.addf %211, %212 : vector<8x128xf32>
    %cst_55 = arith.constant -5.000000e-01 : f32
    %cst_56 = arith.constant 5.000000e-01 : f32
    %214 = vector.broadcast %cst_55 : f32 to vector<8x128xf32>
    %215 = arith.maximumf %214, %213 : vector<8x128xf32>
    %216 = vector.broadcast %cst_56 : f32 to vector<8x128xf32>
    %217 = arith.minimumf %216, %215 : vector<8x128xf32>
    %218 = math.roundeven %217 : vector<8x128xf32>
    %219 = arith.subf %217, %218 : vector<8x128xf32>
    %220 = vector.broadcast %cst_5 : f32 to vector<8x128xf32>
    %221 = arith.mulf %220, %219 : vector<8x128xf32>
    %222 = math.tanh %221 : vector<8x128xf32>
    %cst_57 = arith.constant 1.000000e+00 : f32
    %223 = vector.broadcast %cst_57 : f32 to vector<8x128xf32>
    %224 = arith.subf %223, %210 : vector<8x128xf32>
    %225 = arith.mulf %222, %224 : vector<8x128xf32>
    %226 = vector.broadcast %4 : vector<1x128xf32> to vector<8x128xf32>
    %227 = arith.mulf %210, %226 : vector<8x128xf32>
    %228 = vector.broadcast %5 : vector<1x128xf32> to vector<8x128xf32>
    %229 = arith.mulf %228, %225 : vector<8x128xf32>
    %230 = arith.addf %227, %229 : vector<8x128xf32>
    %cst_58 = arith.constant 0.000000e+00 : f32
    %cst_59 = arith.constant 1.000000e+00 : f32
    %231 = vector.broadcast %cst_58 : f32 to vector<8x128xf32>
    %232 = arith.maximumf %231, %230 : vector<8x128xf32>
    %233 = vector.broadcast %cst_59 : f32 to vector<8x128xf32>
    %234 = arith.minimumf %233, %232 : vector<8x128xf32>
    %235 = arith.select %10, %0, %234 : vector<8x128xi1>, vector<8x128xf32>
    %c9_i32 = arith.constant 9 : i32
    %cst_60 = arith.constant dense<0.000000e+00> : vector<8x128xf32>
    %236 = tpu.matmul %235, %1, %cst_60 {dimension_numbers = #tpu.dot_dimension_numbers<[1], [0], [0], [1], [0, 0, 1, 1], [], []>} : vector<8x128xf32>, vector<128x128xf32>, vector<8x128xf32> -> vector<8x128xf32>
    %237 = vector.broadcast %3 : vector<1x128xf32> to vector<8x128xf32>
    %238 = arith.addf %236, %237 : vector<8x128xf32>
    %cst_61 = arith.constant -5.000000e-01 : f32
    %cst_62 = arith.constant 5.000000e-01 : f32
    %239 = vector.broadcast %cst_61 : f32 to vector<8x128xf32>
    %240 = arith.maximumf %239, %238 : vector<8x128xf32>
    %241 = vector.broadcast %cst_62 : f32 to vector<8x128xf32>
    %242 = arith.minimumf %241, %240 : vector<8x128xf32>
    %243 = math.roundeven %242 : vector<8x128xf32>
    %244 = arith.subf %242, %243 : vector<8x128xf32>
    %245 = vector.broadcast %cst_5 : f32 to vector<8x128xf32>
    %246 = arith.mulf %245, %244 : vector<8x128xf32>
    %247 = math.tanh %246 : vector<8x128xf32>
    %cst_63 = arith.constant 1.000000e+00 : f32
    %248 = vector.broadcast %cst_63 : f32 to vector<8x128xf32>
    %249 = arith.subf %248, %235 : vector<8x128xf32>
    %250 = arith.mulf %247, %249 : vector<8x128xf32>
    %251 = vector.broadcast %4 : vector<1x128xf32> to vector<8x128xf32>
    %252 = arith.mulf %235, %251 : vector<8x128xf32>
    %253 = vector.broadcast %5 : vector<1x128xf32> to vector<8x128xf32>
    %254 = arith.mulf %253, %250 : vector<8x128xf32>
    %255 = arith.addf %252, %254 : vector<8x128xf32>
    %cst_64 = arith.constant 0.000000e+00 : f32
    %cst_65 = arith.constant 1.000000e+00 : f32
    %256 = vector.broadcast %cst_64 : f32 to vector<8x128xf32>
    %257 = arith.maximumf %256, %255 : vector<8x128xf32>
    %258 = vector.broadcast %cst_65 : f32 to vector<8x128xf32>
    %259 = arith.minimumf %258, %257 : vector<8x128xf32>
    %260 = arith.select %10, %0, %259 : vector<8x128xi1>, vector<8x128xf32>
    %c10_i32 = arith.constant 10 : i32
    %cst_66 = arith.constant dense<0.000000e+00> : vector<8x128xf32>
    %261 = tpu.matmul %260, %1, %cst_66 {dimension_numbers = #tpu.dot_dimension_numbers<[1], [0], [0], [1], [0, 0, 1, 1], [], []>} : vector<8x128xf32>, vector<128x128xf32>, vector<8x128xf32> -> vector<8x128xf32>
    %262 = vector.broadcast %3 : vector<1x128xf32> to vector<8x128xf32>
    %263 = arith.addf %261, %262 : vector<8x128xf32>
    %cst_67 = arith.constant -5.000000e-01 : f32
    %cst_68 = arith.constant 5.000000e-01 : f32
    %264 = vector.broadcast %cst_67 : f32 to vector<8x128xf32>
    %265 = arith.maximumf %264, %263 : vector<8x128xf32>
    %266 = vector.broadcast %cst_68 : f32 to vector<8x128xf32>
    %267 = arith.minimumf %266, %265 : vector<8x128xf32>
    %268 = math.roundeven %267 : vector<8x128xf32>
    %269 = arith.subf %267, %268 : vector<8x128xf32>
    %270 = vector.broadcast %cst_5 : f32 to vector<8x128xf32>
    %271 = arith.mulf %270, %269 : vector<8x128xf32>
    %272 = math.tanh %271 : vector<8x128xf32>
    %cst_69 = arith.constant 1.000000e+00 : f32
    %273 = vector.broadcast %cst_69 : f32 to vector<8x128xf32>
    %274 = arith.subf %273, %260 : vector<8x128xf32>
    %275 = arith.mulf %272, %274 : vector<8x128xf32>
    %276 = vector.broadcast %4 : vector<1x128xf32> to vector<8x128xf32>
    %277 = arith.mulf %260, %276 : vector<8x128xf32>
    %278 = vector.broadcast %5 : vector<1x128xf32> to vector<8x128xf32>
    %279 = arith.mulf %278, %275 : vector<8x128xf32>
    %280 = arith.addf %277, %279 : vector<8x128xf32>
    %cst_70 = arith.constant 0.000000e+00 : f32
    %cst_71 = arith.constant 1.000000e+00 : f32
    %281 = vector.broadcast %cst_70 : f32 to vector<8x128xf32>
    %282 = arith.maximumf %281, %280 : vector<8x128xf32>
    %283 = vector.broadcast %cst_71 : f32 to vector<8x128xf32>
    %284 = arith.minimumf %283, %282 : vector<8x128xf32>
    %285 = arith.select %10, %0, %284 : vector<8x128xi1>, vector<8x128xf32>
    %c11_i32 = arith.constant 11 : i32
    %cst_72 = arith.constant dense<0.000000e+00> : vector<8x128xf32>
    %286 = tpu.matmul %285, %1, %cst_72 {dimension_numbers = #tpu.dot_dimension_numbers<[1], [0], [0], [1], [0, 0, 1, 1], [], []>} : vector<8x128xf32>, vector<128x128xf32>, vector<8x128xf32> -> vector<8x128xf32>
    %287 = vector.broadcast %3 : vector<1x128xf32> to vector<8x128xf32>
    %288 = arith.addf %286, %287 : vector<8x128xf32>
    %cst_73 = arith.constant -5.000000e-01 : f32
    %cst_74 = arith.constant 5.000000e-01 : f32
    %289 = vector.broadcast %cst_73 : f32 to vector<8x128xf32>
    %290 = arith.maximumf %289, %288 : vector<8x128xf32>
    %291 = vector.broadcast %cst_74 : f32 to vector<8x128xf32>
    %292 = arith.minimumf %291, %290 : vector<8x128xf32>
    %293 = math.roundeven %292 : vector<8x128xf32>
    %294 = arith.subf %292, %293 : vector<8x128xf32>
    %295 = vector.broadcast %cst_5 : f32 to vector<8x128xf32>
    %296 = arith.mulf %295, %294 : vector<8x128xf32>
    %297 = math.tanh %296 : vector<8x128xf32>
    %cst_75 = arith.constant 1.000000e+00 : f32
    %298 = vector.broadcast %cst_75 : f32 to vector<8x128xf32>
    %299 = arith.subf %298, %285 : vector<8x128xf32>
    %300 = arith.mulf %297, %299 : vector<8x128xf32>
    %301 = vector.broadcast %4 : vector<1x128xf32> to vector<8x128xf32>
    %302 = arith.mulf %285, %301 : vector<8x128xf32>
    %303 = vector.broadcast %5 : vector<1x128xf32> to vector<8x128xf32>
    %304 = arith.mulf %303, %300 : vector<8x128xf32>
    %305 = arith.addf %302, %304 : vector<8x128xf32>
    %cst_76 = arith.constant 0.000000e+00 : f32
    %cst_77 = arith.constant 1.000000e+00 : f32
    %306 = vector.broadcast %cst_76 : f32 to vector<8x128xf32>
    %307 = arith.maximumf %306, %305 : vector<8x128xf32>
    %308 = vector.broadcast %cst_77 : f32 to vector<8x128xf32>
    %309 = arith.minimumf %308, %307 : vector<8x128xf32>
    %310 = arith.select %10, %0, %309 : vector<8x128xi1>, vector<8x128xf32>
    %c12_i32 = arith.constant 12 : i32
    %cst_78 = arith.constant dense<0.000000e+00> : vector<8x128xf32>
    %311 = tpu.matmul %310, %1, %cst_78 {dimension_numbers = #tpu.dot_dimension_numbers<[1], [0], [0], [1], [0, 0, 1, 1], [], []>} : vector<8x128xf32>, vector<128x128xf32>, vector<8x128xf32> -> vector<8x128xf32>
    %312 = vector.broadcast %3 : vector<1x128xf32> to vector<8x128xf32>
    %313 = arith.addf %311, %312 : vector<8x128xf32>
    %cst_79 = arith.constant -5.000000e-01 : f32
    %cst_80 = arith.constant 5.000000e-01 : f32
    %314 = vector.broadcast %cst_79 : f32 to vector<8x128xf32>
    %315 = arith.maximumf %314, %313 : vector<8x128xf32>
    %316 = vector.broadcast %cst_80 : f32 to vector<8x128xf32>
    %317 = arith.minimumf %316, %315 : vector<8x128xf32>
    %318 = math.roundeven %317 : vector<8x128xf32>
    %319 = arith.subf %317, %318 : vector<8x128xf32>
    %320 = vector.broadcast %cst_5 : f32 to vector<8x128xf32>
    %321 = arith.mulf %320, %319 : vector<8x128xf32>
    %322 = math.tanh %321 : vector<8x128xf32>
    %cst_81 = arith.constant 1.000000e+00 : f32
    %323 = vector.broadcast %cst_81 : f32 to vector<8x128xf32>
    %324 = arith.subf %323, %310 : vector<8x128xf32>
    %325 = arith.mulf %322, %324 : vector<8x128xf32>
    %326 = vector.broadcast %4 : vector<1x128xf32> to vector<8x128xf32>
    %327 = arith.mulf %310, %326 : vector<8x128xf32>
    %328 = vector.broadcast %5 : vector<1x128xf32> to vector<8x128xf32>
    %329 = arith.mulf %328, %325 : vector<8x128xf32>
    %330 = arith.addf %327, %329 : vector<8x128xf32>
    %cst_82 = arith.constant 0.000000e+00 : f32
    %cst_83 = arith.constant 1.000000e+00 : f32
    %331 = vector.broadcast %cst_82 : f32 to vector<8x128xf32>
    %332 = arith.maximumf %331, %330 : vector<8x128xf32>
    %333 = vector.broadcast %cst_83 : f32 to vector<8x128xf32>
    %334 = arith.minimumf %333, %332 : vector<8x128xf32>
    %335 = arith.select %10, %0, %334 : vector<8x128xi1>, vector<8x128xf32>
    %c13_i32 = arith.constant 13 : i32
    %cst_84 = arith.constant dense<0.000000e+00> : vector<8x128xf32>
    %336 = tpu.matmul %335, %1, %cst_84 {dimension_numbers = #tpu.dot_dimension_numbers<[1], [0], [0], [1], [0, 0, 1, 1], [], []>} : vector<8x128xf32>, vector<128x128xf32>, vector<8x128xf32> -> vector<8x128xf32>
    %337 = vector.broadcast %3 : vector<1x128xf32> to vector<8x128xf32>
    %338 = arith.addf %336, %337 : vector<8x128xf32>
    %cst_85 = arith.constant -5.000000e-01 : f32
    %cst_86 = arith.constant 5.000000e-01 : f32
    %339 = vector.broadcast %cst_85 : f32 to vector<8x128xf32>
    %340 = arith.maximumf %339, %338 : vector<8x128xf32>
    %341 = vector.broadcast %cst_86 : f32 to vector<8x128xf32>
    %342 = arith.minimumf %341, %340 : vector<8x128xf32>
    %343 = math.roundeven %342 : vector<8x128xf32>
    %344 = arith.subf %342, %343 : vector<8x128xf32>
    %345 = vector.broadcast %cst_5 : f32 to vector<8x128xf32>
    %346 = arith.mulf %345, %344 : vector<8x128xf32>
    %347 = math.tanh %346 : vector<8x128xf32>
    %cst_87 = arith.constant 1.000000e+00 : f32
    %348 = vector.broadcast %cst_87 : f32 to vector<8x128xf32>
    %349 = arith.subf %348, %335 : vector<8x128xf32>
    %350 = arith.mulf %347, %349 : vector<8x128xf32>
    %351 = vector.broadcast %4 : vector<1x128xf32> to vector<8x128xf32>
    %352 = arith.mulf %335, %351 : vector<8x128xf32>
    %353 = vector.broadcast %5 : vector<1x128xf32> to vector<8x128xf32>
    %354 = arith.mulf %353, %350 : vector<8x128xf32>
    %355 = arith.addf %352, %354 : vector<8x128xf32>
    %cst_88 = arith.constant 0.000000e+00 : f32
    %cst_89 = arith.constant 1.000000e+00 : f32
    %356 = vector.broadcast %cst_88 : f32 to vector<8x128xf32>
    %357 = arith.maximumf %356, %355 : vector<8x128xf32>
    %358 = vector.broadcast %cst_89 : f32 to vector<8x128xf32>
    %359 = arith.minimumf %358, %357 : vector<8x128xf32>
    %360 = arith.select %10, %0, %359 : vector<8x128xi1>, vector<8x128xf32>
    %c14_i32 = arith.constant 14 : i32
    %cst_90 = arith.constant dense<0.000000e+00> : vector<8x128xf32>
    %361 = tpu.matmul %360, %1, %cst_90 {dimension_numbers = #tpu.dot_dimension_numbers<[1], [0], [0], [1], [0, 0, 1, 1], [], []>} : vector<8x128xf32>, vector<128x128xf32>, vector<8x128xf32> -> vector<8x128xf32>
    %362 = vector.broadcast %3 : vector<1x128xf32> to vector<8x128xf32>
    %363 = arith.addf %361, %362 : vector<8x128xf32>
    %cst_91 = arith.constant -5.000000e-01 : f32
    %cst_92 = arith.constant 5.000000e-01 : f32
    %364 = vector.broadcast %cst_91 : f32 to vector<8x128xf32>
    %365 = arith.maximumf %364, %363 : vector<8x128xf32>
    %366 = vector.broadcast %cst_92 : f32 to vector<8x128xf32>
    %367 = arith.minimumf %366, %365 : vector<8x128xf32>
    %368 = math.roundeven %367 : vector<8x128xf32>
    %369 = arith.subf %367, %368 : vector<8x128xf32>
    %370 = vector.broadcast %cst_5 : f32 to vector<8x128xf32>
    %371 = arith.mulf %370, %369 : vector<8x128xf32>
    %372 = math.tanh %371 : vector<8x128xf32>
    %cst_93 = arith.constant 1.000000e+00 : f32
    %373 = vector.broadcast %cst_93 : f32 to vector<8x128xf32>
    %374 = arith.subf %373, %360 : vector<8x128xf32>
    %375 = arith.mulf %372, %374 : vector<8x128xf32>
    %376 = vector.broadcast %4 : vector<1x128xf32> to vector<8x128xf32>
    %377 = arith.mulf %360, %376 : vector<8x128xf32>
    %378 = vector.broadcast %5 : vector<1x128xf32> to vector<8x128xf32>
    %379 = arith.mulf %378, %375 : vector<8x128xf32>
    %380 = arith.addf %377, %379 : vector<8x128xf32>
    %cst_94 = arith.constant 0.000000e+00 : f32
    %cst_95 = arith.constant 1.000000e+00 : f32
    %381 = vector.broadcast %cst_94 : f32 to vector<8x128xf32>
    %382 = arith.maximumf %381, %380 : vector<8x128xf32>
    %383 = vector.broadcast %cst_95 : f32 to vector<8x128xf32>
    %384 = arith.minimumf %383, %382 : vector<8x128xf32>
    %385 = arith.select %10, %0, %384 : vector<8x128xi1>, vector<8x128xf32>
    %c15_i32 = arith.constant 15 : i32
    %cst_96 = arith.constant dense<0.000000e+00> : vector<8x128xf32>
    %386 = tpu.matmul %385, %1, %cst_96 {dimension_numbers = #tpu.dot_dimension_numbers<[1], [0], [0], [1], [0, 0, 1, 1], [], []>} : vector<8x128xf32>, vector<128x128xf32>, vector<8x128xf32> -> vector<8x128xf32>
    %387 = vector.broadcast %3 : vector<1x128xf32> to vector<8x128xf32>
    %388 = arith.addf %386, %387 : vector<8x128xf32>
    %cst_97 = arith.constant -5.000000e-01 : f32
    %cst_98 = arith.constant 5.000000e-01 : f32
    %389 = vector.broadcast %cst_97 : f32 to vector<8x128xf32>
    %390 = arith.maximumf %389, %388 : vector<8x128xf32>
    %391 = vector.broadcast %cst_98 : f32 to vector<8x128xf32>
    %392 = arith.minimumf %391, %390 : vector<8x128xf32>
    %393 = math.roundeven %392 : vector<8x128xf32>
    %394 = arith.subf %392, %393 : vector<8x128xf32>
    %395 = vector.broadcast %cst_5 : f32 to vector<8x128xf32>
    %396 = arith.mulf %395, %394 : vector<8x128xf32>
    %397 = math.tanh %396 : vector<8x128xf32>
    %cst_99 = arith.constant 1.000000e+00 : f32
    %398 = vector.broadcast %cst_99 : f32 to vector<8x128xf32>
    %399 = arith.subf %398, %385 : vector<8x128xf32>
    %400 = arith.mulf %397, %399 : vector<8x128xf32>
    %401 = vector.broadcast %4 : vector<1x128xf32> to vector<8x128xf32>
    %402 = arith.mulf %385, %401 : vector<8x128xf32>
    %403 = vector.broadcast %5 : vector<1x128xf32> to vector<8x128xf32>
    %404 = arith.mulf %403, %400 : vector<8x128xf32>
    %405 = arith.addf %402, %404 : vector<8x128xf32>
    %cst_100 = arith.constant 0.000000e+00 : f32
    %cst_101 = arith.constant 1.000000e+00 : f32
    %406 = vector.broadcast %cst_100 : f32 to vector<8x128xf32>
    %407 = arith.maximumf %406, %405 : vector<8x128xf32>
    %408 = vector.broadcast %cst_101 : f32 to vector<8x128xf32>
    %409 = arith.minimumf %408, %407 : vector<8x128xf32>
    %410 = arith.select %10, %0, %409 : vector<8x128xi1>, vector<8x128xf32>
    %c16_i32 = arith.constant 16 : i32
    %cst_102 = arith.constant dense<0.000000e+00> : vector<8x128xf32>
    %411 = tpu.matmul %410, %1, %cst_102 {dimension_numbers = #tpu.dot_dimension_numbers<[1], [0], [0], [1], [0, 0, 1, 1], [], []>} : vector<8x128xf32>, vector<128x128xf32>, vector<8x128xf32> -> vector<8x128xf32>
    %412 = vector.broadcast %3 : vector<1x128xf32> to vector<8x128xf32>
    %413 = arith.addf %411, %412 : vector<8x128xf32>
    %cst_103 = arith.constant -5.000000e-01 : f32
    %cst_104 = arith.constant 5.000000e-01 : f32
    %414 = vector.broadcast %cst_103 : f32 to vector<8x128xf32>
    %415 = arith.maximumf %414, %413 : vector<8x128xf32>
    %416 = vector.broadcast %cst_104 : f32 to vector<8x128xf32>
    %417 = arith.minimumf %416, %415 : vector<8x128xf32>
    %418 = math.roundeven %417 : vector<8x128xf32>
    %419 = arith.subf %417, %418 : vector<8x128xf32>
    %420 = vector.broadcast %cst_5 : f32 to vector<8x128xf32>
    %421 = arith.mulf %420, %419 : vector<8x128xf32>
    %422 = math.tanh %421 : vector<8x128xf32>
    %cst_105 = arith.constant 1.000000e+00 : f32
    %423 = vector.broadcast %cst_105 : f32 to vector<8x128xf32>
    %424 = arith.subf %423, %410 : vector<8x128xf32>
    %425 = arith.mulf %422, %424 : vector<8x128xf32>
    %426 = vector.broadcast %4 : vector<1x128xf32> to vector<8x128xf32>
    %427 = arith.mulf %410, %426 : vector<8x128xf32>
    %428 = vector.broadcast %5 : vector<1x128xf32> to vector<8x128xf32>
    %429 = arith.mulf %428, %425 : vector<8x128xf32>
    %430 = arith.addf %427, %429 : vector<8x128xf32>
    %cst_106 = arith.constant 0.000000e+00 : f32
    %cst_107 = arith.constant 1.000000e+00 : f32
    %431 = vector.broadcast %cst_106 : f32 to vector<8x128xf32>
    %432 = arith.maximumf %431, %430 : vector<8x128xf32>
    %433 = vector.broadcast %cst_107 : f32 to vector<8x128xf32>
    %434 = arith.minimumf %433, %432 : vector<8x128xf32>
    %435 = arith.select %10, %0, %434 : vector<8x128xi1>, vector<8x128xf32>
    %c17_i32 = arith.constant 17 : i32
    %cst_108 = arith.constant dense<0.000000e+00> : vector<8x128xf32>
    %436 = tpu.matmul %435, %1, %cst_108 {dimension_numbers = #tpu.dot_dimension_numbers<[1], [0], [0], [1], [0, 0, 1, 1], [], []>} : vector<8x128xf32>, vector<128x128xf32>, vector<8x128xf32> -> vector<8x128xf32>
    %437 = vector.broadcast %3 : vector<1x128xf32> to vector<8x128xf32>
    %438 = arith.addf %436, %437 : vector<8x128xf32>
    %cst_109 = arith.constant -5.000000e-01 : f32
    %cst_110 = arith.constant 5.000000e-01 : f32
    %439 = vector.broadcast %cst_109 : f32 to vector<8x128xf32>
    %440 = arith.maximumf %439, %438 : vector<8x128xf32>
    %441 = vector.broadcast %cst_110 : f32 to vector<8x128xf32>
    %442 = arith.minimumf %441, %440 : vector<8x128xf32>
    %443 = math.roundeven %442 : vector<8x128xf32>
    %444 = arith.subf %442, %443 : vector<8x128xf32>
    %445 = vector.broadcast %cst_5 : f32 to vector<8x128xf32>
    %446 = arith.mulf %445, %444 : vector<8x128xf32>
    %447 = math.tanh %446 : vector<8x128xf32>
    %cst_111 = arith.constant 1.000000e+00 : f32
    %448 = vector.broadcast %cst_111 : f32 to vector<8x128xf32>
    %449 = arith.subf %448, %435 : vector<8x128xf32>
    %450 = arith.mulf %447, %449 : vector<8x128xf32>
    %451 = vector.broadcast %4 : vector<1x128xf32> to vector<8x128xf32>
    %452 = arith.mulf %435, %451 : vector<8x128xf32>
    %453 = vector.broadcast %5 : vector<1x128xf32> to vector<8x128xf32>
    %454 = arith.mulf %453, %450 : vector<8x128xf32>
    %455 = arith.addf %452, %454 : vector<8x128xf32>
    %cst_112 = arith.constant 0.000000e+00 : f32
    %cst_113 = arith.constant 1.000000e+00 : f32
    %456 = vector.broadcast %cst_112 : f32 to vector<8x128xf32>
    %457 = arith.maximumf %456, %455 : vector<8x128xf32>
    %458 = vector.broadcast %cst_113 : f32 to vector<8x128xf32>
    %459 = arith.minimumf %458, %457 : vector<8x128xf32>
    %460 = arith.select %10, %0, %459 : vector<8x128xi1>, vector<8x128xf32>
    %c18_i32 = arith.constant 18 : i32
    %cst_114 = arith.constant dense<0.000000e+00> : vector<8x128xf32>
    %461 = tpu.matmul %460, %1, %cst_114 {dimension_numbers = #tpu.dot_dimension_numbers<[1], [0], [0], [1], [0, 0, 1, 1], [], []>} : vector<8x128xf32>, vector<128x128xf32>, vector<8x128xf32> -> vector<8x128xf32>
    %462 = vector.broadcast %3 : vector<1x128xf32> to vector<8x128xf32>
    %463 = arith.addf %461, %462 : vector<8x128xf32>
    %cst_115 = arith.constant -5.000000e-01 : f32
    %cst_116 = arith.constant 5.000000e-01 : f32
    %464 = vector.broadcast %cst_115 : f32 to vector<8x128xf32>
    %465 = arith.maximumf %464, %463 : vector<8x128xf32>
    %466 = vector.broadcast %cst_116 : f32 to vector<8x128xf32>
    %467 = arith.minimumf %466, %465 : vector<8x128xf32>
    %468 = math.roundeven %467 : vector<8x128xf32>
    %469 = arith.subf %467, %468 : vector<8x128xf32>
    %470 = vector.broadcast %cst_5 : f32 to vector<8x128xf32>
    %471 = arith.mulf %470, %469 : vector<8x128xf32>
    %472 = math.tanh %471 : vector<8x128xf32>
    %cst_117 = arith.constant 1.000000e+00 : f32
    %473 = vector.broadcast %cst_117 : f32 to vector<8x128xf32>
    %474 = arith.subf %473, %460 : vector<8x128xf32>
    %475 = arith.mulf %472, %474 : vector<8x128xf32>
    %476 = vector.broadcast %4 : vector<1x128xf32> to vector<8x128xf32>
    %477 = arith.mulf %460, %476 : vector<8x128xf32>
    %478 = vector.broadcast %5 : vector<1x128xf32> to vector<8x128xf32>
    %479 = arith.mulf %478, %475 : vector<8x128xf32>
    %480 = arith.addf %477, %479 : vector<8x128xf32>
    %cst_118 = arith.constant 0.000000e+00 : f32
    %cst_119 = arith.constant 1.000000e+00 : f32
    %481 = vector.broadcast %cst_118 : f32 to vector<8x128xf32>
    %482 = arith.maximumf %481, %480 : vector<8x128xf32>
    %483 = vector.broadcast %cst_119 : f32 to vector<8x128xf32>
    %484 = arith.minimumf %483, %482 : vector<8x128xf32>
    %485 = arith.select %10, %0, %484 : vector<8x128xi1>, vector<8x128xf32>
    %c0_120 = arith.constant 0 : index
    %c0_121 = arith.constant 0 : index
    %486 = vector.load %arg4[%c0_120, %c0_121] : memref<8x128xf32, #tpu.memory_space<vmem>>, vector<8x128xf32>
    tpu.vector_store %arg4[%c0_120, %c0_121], %485 {strides = array<i32>} : memref<8x128xf32, #tpu.memory_space<vmem>>, vector<8x128xf32>,
    return
  }
  func.func @transform_0(%arg0: i32) -> (i32, i32) {
    %c0_i32 = arith.constant 0 : i32
    %c0_i32_0 = arith.constant 0 : i32
    return %arg0, %c0_i32 : i32, i32
  }
  func.func @transform_1(%arg0: i32) -> (i32, i32) {
    %c0_i32 = arith.constant 0 : i32
    %c0_i32_0 = arith.constant 0 : i32
    %c0_i32_1 = arith.constant 0 : i32
    return %c0_i32, %c0_i32_0 : i32, i32
  }
  func.func @transform_2(%arg0: i32) -> (i32, i32) {
    %c0_i32 = arith.constant 0 : i32
    %c0_i32_0 = arith.constant 0 : i32
    %c0_i32_1 = arith.constant 0 : i32
    return %c0_i32, %c0_i32_0 : i32, i32
  }
  func.func @transform_3(%arg0: i32) -> (i32, i32) {
    %c0_i32 = arith.constant 0 : i32
    %c0_i32_0 = arith.constant 0 : i32
    return %arg0, %c0_i32 : i32, i32
  }
}

</mosaic_0001>

<bundles_post_ra>
// kernel: tpu_custom_call.1
= control target key start
LH: loop header
LB: loop body
LE: loop exit
PB: predicated region body
PF: predicated region fallthrough
CT: control target
= control target key end

     0   :  { %8 = vsyncpa [#allocation3], 0  ;;  %s3897_s0 = inlined_call_operand.hbm [shape: f32[8,128], index: 0, kind: input, shape index: {}]   ;;  %s3898_s1 = inlined_call_operand.hbm [shape: f32[8,128], index: 1, kind: input, shape index: {}]   ;;  %s3899_s2 = inlined_call_operand.hbm [shape: f32[128,128], index: 2, kind: input, shape index: {}]   ;;  %s3900_s3 = inlined_call_operand.hbm [shape: f32[8,128], index: 3, kind: output, shape index: {}]  }
   0x1   :  { %9 = vsyncpa [#allocation6], 0 }
   0x2   :  { %10 = vsyncpa [#allocation4], 0  ;;  %s3012_s12 = smov [#allocation5]   ;;  %s3013_s14 = smov [#allocation2]  }
   0x3   :  { %s27_s13 = sshll.u32 %s3012_s12, 4  ;;  %s17_s15 = sshll.u32 %s3013_s14, 4  ;;  %s28_s13 = int_to_ptr.vmem [resolvable:$true] %s27_s13  ;;  %s18_s15 = int_to_ptr.vmem [resolvable:$true] %s17_s15 }
   0x4   :  { %s2934_s16 = scalar_lea.vmem %s28_s13, 128  ;;  %p2939_p1 = scmp.lt.s32.totalorder %s28_s13, %s28_s13 }
   0x5   :  { %p2935_p0 = scmp.ne.s32.totalorder %s28_s13, %s2934_s16  ;;  %p2940_p2 = scmp.lt.s32.totalorder %s2934_s16, %s2934_s16 }
   0x7   :  { %p2941_p3 = por %p2940_p2, %p2939_p1 }
   0x9   :  { %p2942_p4 = pnand %p2941_p3, %p2935_p0 }
   0xb   :  { %2945 = shalt.err (!%p2942_p4)
}
   0xc   :  { %30 = dma.hbm_to_vmem [thread:$0]  %s3898_s1, 128, %s28_s13, [#allocation6]  }
   0xd   :  { %s2954_s19 = scalar_lea.vmem %s18_s15, 128  ;;  %p2959_p6 = scmp.lt.s32.totalorder %s18_s15, %s18_s15 }
   0xe   :  { %p2955_p5 = scmp.ne.s32.totalorder %s18_s15, %s2954_s19  ;;  %p2960_p7 = scmp.lt.s32.totalorder %s2954_s19, %s2954_s19 }
  0x10   :  { %p2961_p8 = por %p2960_p7, %p2959_p6 }
  0x12   :  { %p2962_p9 = pnand %p2961_p8, %p2955_p5 }
  0x14   :  { %2965 = shalt.err (!%p2962_p9)
}
  0x15   :  { %20 = dma.hbm_to_vmem [thread:$0]  %s3897_s0, 128, %s18_s15, [#allocation3]  }
  0x16   :  { %s3014_s22 = smov [#allocation7]  }
  0x17   :  { %s36_s23 = sshll.u32 %s3014_s22, 4  ;;  %s37_s23 = int_to_ptr.vmem [resolvable:$true] %s36_s23 }
  0x18   :  { %s2974_s24 = scalar_lea.vmem %s37_s23, 2048  ;;  %p2979_p11 = scmp.lt.s32.totalorder %s37_s23, %s37_s23 }
  0x19   :  { %p2975_p10 = scmp.ne.s32.totalorder %s37_s23, %s2974_s24  ;;  %p2980_p12 = scmp.lt.s32.totalorder %s2974_s24, %s2974_s24 }
  0x1b   :  { %p2981_p13 = por %p2980_p12, %p2979_p11 }
  0x1d   :  { %p2982_p0 = pnand %p2981_p13, %p2975_p10 }
  0x1f   :  { %2985 = shalt.err (!%p2982_p0)
}
  0x20   :  { %s3015_s1 = smov 128   ;;  %s3016_s25 = smov 8  }
  0x21   :  { %42 = dma.hbm_to_vmem [thread:$0]  %s3899_s2, 2048, %s37_s23, [#allocation6], %s3015_s1, %s3015_s1, %s3016_s25  }
  0x22   :  { %3006 = dma.done.wait [#allocation3], 128  }
  0x23   :  { %3007 = vsyncadd [#allocation3], 4294967168 }
  0x24   :  { %3008 = dma.done.wait [#allocation6], 2176  }
  0x25   :  { %3009 = vsyncadd [#allocation6], 4294965120  ;;  %v3017_v0 = vmov 0.0   ;;  %vm3018_vm0 = vmmov 0   ;;  %v3056_v1 = vld [vmem:[#allocation7 + $0x78] sm:$0xff]  ;;  %v3058_v2 = vld [vmem:[#allocation7 + $0x70] sm:$0xff]  ;;  %v72_v18 = vlaneseq }
  0x26   :  { %2044 = vmatprep.subr.mxu0 %v3017_v0  ;;  %2076 = vmatprep.mubr.msk.f32.mxu0 %vm3018_vm0, %v3017_v0  ;;  %v3063_v3 = vld [vmem:[#allocation7 + $0x68] sm:$0xff]  ;;  %v3069_v4 = vld [vmem:[#allocation7 + $0x60] sm:$0xff]  ;;  %v3075_v5 = vld [vmem:[#allocation7 + $0x58] sm:$0xff]  ;;  %v3019_v43 = vmov 0   ;;  %s3020_s0 = smov [#allocation8]  }
  0x27   :  { %2079 = vmatprep.subr.mxu1 %v3017_v0  ;;  %2111 = vmatprep.mubr.msk.f32.mxu1 %vm3018_vm0, %v3017_v0  ;;  %v3081_v6 = vld [vmem:[#allocation7 + $0x50] sm:$0xff]  ;;  %v3087_v7 = vld [vmem:[#allocation7 + $0x48] sm:$0xff]  ;;  %v3093_v8 = vld [vmem:[#allocation7 + $0x40] sm:$0xff]  ;;  %v73_v19 = vshrl.u32 %v72_v18, 7  ;;  %s1692_s2 = sshll.u32 %s3020_s0, 4  ;;  %s1693_s2 = int_to_ptr.vmem [resolvable:$true] %s1692_s2 }
  0x28   :  { %2045 = vmatpush3.msra.mxu0 %v3056_v1  ;;  %2080 = vmatpush3.msra.mxu1 %v3056_v1  ;;  %v3099_v9 = vld [vmem:[#allocation7 + $0x38] sm:$0xff]  ;;  %v3105_v10 = vld [vmem:[#allocation7 + $0x30] sm:$0xff]  ;;  %v3111_v11 = vld [vmem:[#allocation7 + $0x28] sm:$0xff]  ;;  %s2986_s28 = scalar_lea.vmem %s1693_s2, 128  ;;  %p2991_p2 = scmp.lt.s32.totalorder %s1693_s2, %s1693_s2 }
  0x29   :  { %2046 = vmatprep.subr.mxu0 %v3017_v0  ;;  %2081 = vmatprep.subr.mxu1 %v3017_v0  ;;  %v3117_v12 = vld [vmem:[#allocation7 + $0x20] sm:$0xff]  ;;  %v3123_v13 = vld [vmem:[#allocation7 + $0x18] sm:$0xff]  ;;  %v3129_v14 = vld [vmem:[#allocation7 + $0x10] sm:$0xff]  ;;  %v79_v20 = vsub.s32 0, %v73_v19  ;;  %v161_v36 = vsub.s32 1, %v73_v19  ;;  %v166_v37 = vsub.s32 2, %v73_v19  ;;  %p2987_p1 = scmp.ne.s32.totalorder %s1693_s2, %s2986_s28  ;;  %p2992_p3 = scmp.lt.s32.totalorder %s2986_s28, %s2986_s28 }
  0x2a   :  { %2047 = vmatpush3.msra.mxu0 %v3058_v2  ;;  %2082 = vmatpush3.msra.mxu1 %v3058_v2  ;;  %v3135_v15 = vld [vmem:[#allocation7 + $0x8] sm:$0xff]  ;;  %v3141_v16 = vld [vmem:[#allocation7] sm:$0xff]  ;;  %v3145_v17 = vld [vmem:[#allocation2] sm:$0xff]  ;;  %v74_v42 = vsub.s32 3, %v73_v19 }
  0x2b   :  { %2048 = vmatprep.subr.mxu0 %v3017_v0  ;;  %2083 = vmatprep.subr.mxu1 %v3017_v0  ;;  %v69_v21 = vld [vmem:[#allocation5] sm:$0xff]  ;;  %v157_v38 = vsub.f32 1.0, %v3145_v17  ;;  %p2993_p4 = por %p2992_p3, %p2991_p2 }
  0x2c   :  { %2049 = vmatpush3.msra.mxu0 %v3063_v3  ;;  %2084 = vmatpush3.msra.mxu1 %v3063_v3  ;;  %v3189_v22 = vrot.slane %v69_v21, %v79_v20  ;;  %v3193_v39 = vrot.slane %v69_v21, %v161_v36  ;;  %vm70_vm2 = vcmp.ne.f32.partialorder %v69_v21, 0.0  ;;  %v3195_v40 = vrot.slane %v69_v21, %v166_v37 }
  0x2d   :  { %2050 = vmatprep.subr.mxu0 %v3017_v0  ;;  %2085 = vmatprep.subr.mxu1 %v3017_v0  ;;  %v71_v44 = vsel %vm70_vm2, 1, %v3019_v43  ;;  %p2994_p5 = pnand %p2993_p4, %p2987_p1 }
  0x2e   :  { %2051 = vmatpush3.msra.mxu0 %v3069_v4  ;;  %2086 = vmatpush3.msra.mxu1 %v3069_v4  ;;  %v163_v46 = vmul.f32 %v3193_v39, %v3145_v17  ;;  %v3200_v48 = vrot.slane %v71_v44, %v74_v42 }
  0x2f   :  { %2052 = vmatprep.subr.mxu0 %v3017_v0  ;;  %2087 = vmatprep.subr.mxu1 %v3017_v0 }
  0x30   :  { %2053 = vmatpush3.msra.mxu0 %v3075_v5  ;;  %2088 = vmatpush3.msra.mxu1 %v3075_v5  ;;  %vm76_vm3 = vcmp.eq.s32.totalorder %v3200_v48, 1 }
  0x31   :  { %2054 = vmatprep.subr.mxu0 %v3017_v0  ;;  %2089 = vmatprep.subr.mxu1 %v3017_v0 }
  0x32   :  { %2055 = vmatpush3.msra.mxu0 %v3081_v6  ;;  %2090 = vmatpush3.msra.mxu1 %v3081_v6 }
  0x33   :  { %2056 = vmatprep.subr.mxu0 %v3017_v0  ;;  %2091 = vmatprep.subr.mxu1 %v3017_v0 }
  0x34   :  { %2057 = vmatpush3.msra.mxu0 %v3087_v7  ;;  %2092 = vmatpush3.msra.mxu1 %v3087_v7 }
  0x35   :  { %2058 = vmatprep.subr.mxu0 %v3017_v0  ;;  %2093 = vmatprep.subr.mxu1 %v3017_v0 }
  0x36   :  { %2059 = vmatpush3.msra.mxu0 %v3093_v8  ;;  %2094 = vmatpush3.msra.mxu1 %v3093_v8 }
  0x37   :  { %2060 = vmatprep.subr.mxu0 %v3017_v0  ;;  %2095 = vmatprep.subr.mxu1 %v3017_v0 }
  0x38   :  { %2061 = vmatpush3.msra.mxu0 %v3099_v9  ;;  %2096 = vmatpush3.msra.mxu1 %v3099_v9 }
  0x39   :  { %2062 = vmatprep.subr.mxu0 %v3017_v0  ;;  %2097 = vmatprep.subr.mxu1 %v3017_v0 }
  0x3a   :  { %2063 = vmatpush3.msra.mxu0 %v3105_v10  ;;  %2098 = vmatpush3.msra.mxu1 %v3105_v10 }
  0x3b   :  { %2064 = vmatprep.subr.mxu0 %v3017_v0  ;;  %2099 = vmatprep.subr.mxu1 %v3017_v0 }
  0x3c   :  { %2065 = vmatpush3.msra.mxu0 %v3111_v11  ;;  %2100 = vmatpush3.msra.mxu1 %v3111_v11 }
  0x3d   :  { %2066 = vmatprep.subr.mxu0 %v3017_v0  ;;  %2101 = vmatprep.subr.mxu1 %v3017_v0 }
  0x3e   :  { %2067 = vmatpush3.msra.mxu0 %v3117_v12  ;;  %2102 = vmatpush3.msra.mxu1 %v3117_v12 }
  0x3f   :  { %2068 = vmatprep.subr.mxu0 %v3017_v0  ;;  %2103 = vmatprep.subr.mxu1 %v3017_v0 }
  0x40   :  { %2069 = vmatpush3.msra.mxu0 %v3123_v13  ;;  %2104 = vmatpush3.msra.mxu1 %v3123_v13 }
  0x41   :  { %2070 = vmatprep.subr.mxu0 %v3017_v0  ;;  %2105 = vmatprep.subr.mxu1 %v3017_v0 }
  0x42   :  { %2071 = vmatpush3.msra.mxu0 %v3129_v14  ;;  %2106 = vmatpush3.msra.mxu1 %v3129_v14 }
  0x43   :  { %2072 = vmatprep.subr.mxu0 %v3017_v0  ;;  %2107 = vmatprep.subr.mxu1 %v3017_v0 }
  0x44   :  { %2073 = vmatpush3.msra.mxu0 %v3135_v15  ;;  %2108 = vmatpush3.msra.mxu1 %v3135_v15 }
  0x45   :  { %2074 = vmatprep.subr.mxu0 %v3017_v0  ;;  %2109 = vmatprep.subr.mxu1 %v3017_v0 }
  0x46   :  { %2075 = vmatpush3.msra.mxu0 %v3141_v16  ;;  %2110 = vmatpush3.msra.mxu1 %v3141_v16 }
  0x47   :  { %2077 = vmatmul.mubr.f32.vlgmr.msra.gmra.mxu0 %v3145_v17  ;;  %2114 = vmatprep.subr.mxu0 %v3017_v0 }
  0x48   :  { %2115 = vmatpush3.msra.mxu0 %v3056_v1  ;;  %2146 = vmatprep.mubr.msk.f32.mxu0 %vm3018_vm0, %v3017_v0 }
  0x49   :  { %2116 = vmatprep.subr.mxu0 %v3017_v0  ;;  %2149 = vmatprep.subr.mxu1 %v3017_v0 }
  0x4a   :  { %2117 = vmatpush3.msra.mxu0 %v3058_v2 }
  0x4b   :  { %2118 = vmatprep.subr.mxu0 %v3017_v0 }
  0x4c   :  { %2119 = vmatpush3.msra.mxu0 %v3063_v3 }
  0x4d   :  { %2120 = vmatprep.subr.mxu0 %v3017_v0 }
  0x4e   :  { %2121 = vmatpush3.msra.mxu0 %v3069_v4 }
  0x4f   :  { %2122 = vmatprep.subr.mxu0 %v3017_v0 }
  0x50   :  { %2123 = vmatpush3.msra.mxu0 %v3075_v5 }
  0x51   :  { %2124 = vmatprep.subr.mxu0 %v3017_v0 }
  0x52   :  { %2125 = vmatpush3.msra.mxu0 %v3081_v6 }
  0x53   :  { %2126 = vmatprep.subr.mxu0 %v3017_v0 }
  0x54   :  { %2127 = vmatpush3.msra.mxu0 %v3087_v7 }
  0x55   :  { %2128 = vmatprep.subr.mxu0 %v3017_v0 }
  0x56   :  { %2129 = vmatpush3.msra.mxu0 %v3093_v8 }
  0x57   :  { %2130 = vmatprep.subr.mxu0 %v3017_v0 }
  0x58   :  { %2131 = vmatpush3.msra.mxu0 %v3099_v9 }
  0x59   :  { %2132 = vmatprep.subr.mxu0 %v3017_v0 }
  0x5a   :  { %2133 = vmatpush3.msra.mxu0 %v3105_v10 }
  0x5b   :  { %2134 = vmatprep.subr.mxu0 %v3017_v0 }
  0x5c   :  { %2135 = vmatpush3.msra.mxu0 %v3111_v11 }
  0x5d   :  { %2136 = vmatprep.subr.mxu0 %v3017_v0 }
  0x5e   :  { %2137 = vmatpush3.msra.mxu0 %v3117_v12 }
  0x5f   :  { %2138 = vmatprep.subr.mxu0 %v3017_v0 }
  0x60   :  { %2139 = vmatpush3.msra.mxu0 %v3123_v13 }
  0x61   :  { %2140 = vmatprep.subr.mxu0 %v3017_v0 }
  0x62   :  { %2141 = vmatpush3.msra.mxu0 %v3129_v14 }
  0x63   :  { %2142 = vmatprep.subr.mxu0 %v3017_v0 }
  0x64   :  { %2143 = vmatpush3.msra.mxu0 %v3135_v15 }
  0x65   :  { %2144 = vmatprep.subr.mxu0 %v3017_v0 }
  0x66   :  { %2145 = vmatpush3.msra.mxu0 %v3141_v16 }
  0x67   :  { %2184 = vmatprep.subr.mxu0 %v3017_v0 }
 0x107   :  { %v147_v23 = vpop.f32.mrf.mxu0 }
 0x108   :  { %v148_v24 = vadd.f32 %v147_v23, %v3189_v22 }
 0x109   :  { %v2078_v25 = vpop.f32.mrf.mxu0 }
 0x10a   :  { %v1702_v26 = vclamps-f32 %v148_v24, 0.5 }
 0x10c   :  { %v2711_v27 = vcvt.f32.s32 %v1702_v26  ;;  %v2709_v29 = vand.u32 2147483647, %v1702_v26  ;;  %v2714_v31 = vand.u32 2147483648, %v1702_v26 }
 0x10e   :  { %v2712_v28 = vcvt.s32.f32 %v2711_v27  ;;  %vm2710_vm1 = vcmp.lt.f32.partialorder %v2709_v29, 8388608.0 }
 0x110   :  { %v2713_v30 = vand.u32 2147483647, %v2712_v28 }
 0x112   :  { %v2715_v32 = vor.u32 %v2714_v31, %v2713_v30 }
 0x114   :  { %v2716_v33 = vsel %vm2710_vm1, %v2715_v32, %v1702_v26 }
 0x115   :  { %v154_v34 = vsub.f32 %v1702_v26, %v2716_v33 }
 0x117   :  { %v155_v35 = vmul.f32 6.2831855, %v154_v34 }
 0x119   :  { %2870 = vtanh.f32 %v155_v35 }
 0x126   :  { %v2871_v41 = vpop.eup %2870 }
 0x127   :  { %v158_v45 = vmul.f32 %v2871_v41, %v157_v38 }
 0x129   :  { %v168_v47 = vmul.f32 %v3195_v40, %v158_v45 }
 0x12b   :  { %v169_v49 = vadd.f32 %v168_v47, %v163_v46 }
 0x12d   :  { %v170_v50 = vmax.f32 %v169_v49, 0.0 }
 0x12f   :  { %v171_v51 = vmin.f32 %v170_v50, 1.0 }
 0x131   :  { %v172_v52 = vsel %vm76_vm3, %v3145_v17, %v171_v51 }
 0x132   :  { %2112 = vmatmul.mubr.f32.vlgmr.msra.gmra.mxu1 %v172_v52  ;;  %v249_v20 = vsub.f32 1.0, %v172_v52  ;;  %v251_v24 = vmul.f32 %v172_v52, %v3193_v39 }
 0x133   :  { %2150 = vmatpush3.msra.mxu1 %v3056_v1  ;;  %2181 = vmatprep.mubr.msk.f32.mxu1 %vm3018_vm0, %v3017_v0 }
 0x134   :  { %2151 = vmatprep.subr.mxu1 %v3017_v0 }
 0x135   :  { %2152 = vmatpush3.msra.mxu1 %v3058_v2 }
 0x136   :  { %2153 = vmatprep.subr.mxu1 %v3017_v0 }
 0x137   :  { %2154 = vmatpush3.msra.mxu1 %v3063_v3 }
 0x138   :  { %2155 = vmatprep.subr.mxu1 %v3017_v0 }
 0x139   :  { %2156 = vmatpush3.msra.mxu1 %v3069_v4 }
 0x13a   :  { %2157 = vmatprep.subr.mxu1 %v3017_v0 }
 0x13b   :  { %2158 = vmatpush3.msra.mxu1 %v3075_v5 }
 0x13c   :  { %2159 = vmatprep.subr.mxu1 %v3017_v0 }
 0x13d   :  { %2160 = vmatpush3.msra.mxu1 %v3081_v6 }
 0x13e   :  { %2161 = vmatprep.subr.mxu1 %v3017_v0 }
 0x13f   :  { %2162 = vmatpush3.msra.mxu1 %v3087_v7 }
 0x140   :  { %2163 = vmatprep.subr.mxu1 %v3017_v0 }
 0x141   :  { %2164 = vmatpush3.msra.mxu1 %v3093_v8 }
 0x142   :  { %2165 = vmatprep.subr.mxu1 %v3017_v0 }
 0x143   :  { %2166 = vmatpush3.msra.mxu1 %v3099_v9 }
 0x144   :  { %2167 = vmatprep.subr.mxu1 %v3017_v0 }
 0x145   :  { %2168 = vmatpush3.msra.mxu1 %v3105_v10 }
 0x146   :  { %2169 = vmatprep.subr.mxu1 %v3017_v0 }
 0x147   :  { %2170 = vmatpush3.msra.mxu1 %v3111_v11 }
 0x148   :  { %2171 = vmatprep.subr.mxu1 %v3017_v0 }
 0x149   :  { %2172 = vmatpush3.msra.mxu1 %v3117_v12 }
 0x14a   :  { %2173 = vmatprep.subr.mxu1 %v3017_v0 }
 0x14b   :  { %2174 = vmatpush3.msra.mxu1 %v3123_v13 }
 0x14c   :  { %2175 = vmatprep.subr.mxu1 %v3017_v0 }
 0x14d   :  { %2176 = vmatpush3.msra.mxu1 %v3129_v14 }
 0x14e   :  { %2177 = vmatprep.subr.mxu1 %v3017_v0 }
 0x14f   :  { %2178 = vmatpush3.msra.mxu1 %v3135_v15 }
 0x150   :  { %2179 = vmatprep.subr.mxu1 %v3017_v0 }
 0x151   :  { %2180 = vmatpush3.msra.mxu1 %v3141_v16 }
 0x152   :  { %2219 = vmatprep.subr.mxu1 %v3017_v0 }
 0x1f2   :  { %v239_v53 = vpop.f32.mrf.mxu1 }
 0x1f3   :  { %v240_v54 = vadd.f32 %v239_v53, %v3189_v22 }
 0x1f4   :  { %v2113_v55 = vpop.f32.mrf.mxu1 }
 0x1f5   :  { %v1703_v56 = vclamps-f32 %v240_v54, 0.5 }
 0x1f7   :  { %v2719_v57 = vcvt.f32.s32 %v1703_v56  ;;  %v2717_v59 = vand.u32 2147483647, %v1703_v56  ;;  %v2722_v61 = vand.u32 2147483648, %v1703_v56 }
 0x1f9   :  { %v2720_v58 = vcvt.s32.f32 %v2719_v57  ;;  %vm2718_vm4 = vcmp.lt.f32.partialorder %v2717_v59, 8388608.0 }
 0x1fb   :  { %v2721_v60 = vand.u32 2147483647, %v2720_v58 }
 0x1fd   :  { %v2723_v62 = vor.u32 %v2722_v61, %v2721_v60 }
 0x1ff   :  { %v2724_v63 = vsel %vm2718_vm4, %v2723_v62, %v1703_v56 }
 0x200   :  { %v246_v18 = vsub.f32 %v1703_v56, %v2724_v63 }
 0x202   :  { %v247_v19 = vmul.f32 6.2831855, %v246_v18 }
 0x204   :  { %2872 = vtanh.f32 %v247_v19 }
 0x211   :  { %v2873_v21 = vpop.eup %2872 }
 0x212   :  { %v250_v23 = vmul.f32 %v2873_v21, %v249_v20 }
 0x214   :  { %v252_v25 = vmul.f32 %v250_v23, %v3195_v40 }
 0x216   :  { %v253_v26 = vadd.f32 %v252_v25, %v251_v24 }
 0x218   :  { %v254_v27 = vmax.f32 %v253_v26, 0.0 }
 0x21a   :  { %v255_v28 = vmin.f32 %v254_v27, 1.0 }
 0x21c   :  { %v256_v29 = vsel %vm76_vm3, %v3145_v17, %v255_v28 }
 0x21d   :  { %2147 = vmatmul.mubr.f32.vlgmr.msra.gmra.mxu0 %v256_v29  ;;  %v333_v45 = vsub.f32 1.0, %v256_v29  ;;  %v335_v49 = vmul.f32 %v256_v29, %v3193_v39 }
 0x21e   :  { %2185 = vmatpush3.msra.mxu0 %v3056_v1  ;;  %2216 = vmatprep.mubr.msk.f32.mxu0 %vm3018_vm0, %v3017_v0 }
 0x21f   :  { %2186 = vmatprep.subr.mxu0 %v3017_v0 }
 0x220   :  { %2187 = vmatpush3.msra.mxu0 %v3058_v2 }
 0x221   :  { %2188 = vmatprep.subr.mxu0 %v3017_v0 }
 0x222   :  { %2189 = vmatpush3.msra.mxu0 %v3063_v3 }
 0x223   :  { %2190 = vmatprep.subr.mxu0 %v3017_v0 }
 0x224   :  { %2191 = vmatpush3.msra.mxu0 %v3069_v4 }
 0x225   :  { %2192 = vmatprep.subr.mxu0 %v3017_v0 }
 0x226   :  { %2193 = vmatpush3.msra.mxu0 %v3075_v5 }
 0x227   :  { %2194 = vmatprep.subr.mxu0 %v3017_v0 }
 0x228   :  { %2195 = vmatpush3.msra.mxu0 %v3081_v6 }
 0x229   :  { %2196 = vmatprep.subr.mxu0 %v3017_v0 }
 0x22a   :  { %2197 = vmatpush3.msra.mxu0 %v3087_v7 }
 0x22b   :  { %2198 = vmatprep.subr.mxu0 %v3017_v0 }
 0x22c   :  { %2199 = vmatpush3.msra.mxu0 %v3093_v8 }
 0x22d   :  { %2200 = vmatprep.subr.mxu0 %v3017_v0 }
 0x22e   :  { %2201 = vmatpush3.msra.mxu0 %v3099_v9 }
 0x22f   :  { %2202 = vmatprep.subr.mxu0 %v3017_v0 }
 0x230   :  { %2203 = vmatpush3.msra.mxu0 %v3105_v10 }
 0x231   :  { %2204 = vmatprep.subr.mxu0 %v3017_v0 }
 0x232   :  { %2205 = vmatpush3.msra.mxu0 %v3111_v11 }
 0x233   :  { %2206 = vmatprep.subr.mxu0 %v3017_v0 }
 0x234   :  { %2207 = vmatpush3.msra.mxu0 %v3117_v12 }
 0x235   :  { %2208 = vmatprep.subr.mxu0 %v3017_v0 }
 0x236   :  { %2209 = vmatpush3.msra.mxu0 %v3123_v13 }
 0x237   :  { %2210 = vmatprep.subr.mxu0 %v3017_v0 }
 0x238   :  { %2211 = vmatpush3.msra.mxu0 %v3129_v14 }
 0x239   :  { %2212 = vmatprep.subr.mxu0 %v3017_v0 }
 0x23a   :  { %2213 = vmatpush3.msra.mxu0 %v3135_v15 }
 0x23b   :  { %2214 = vmatprep.subr.mxu0 %v3017_v0 }
 0x23c   :  { %2215 = vmatpush3.msra.mxu0 %v3141_v16 }
 0x23d   :  { %2254 = vmatprep.subr.mxu0 %v3017_v0 }
 0x2dd   :  { %v323_v30 = vpop.f32.mrf.mxu0 }
 0x2de   :  { %v324_v31 = vadd.f32 %v323_v30, %v3189_v22 }
 0x2df   :  { %v2148_v32 = vpop.f32.mrf.mxu0 }
 0x2e0   :  { %v1704_v33 = vclamps-f32 %v324_v31, 0.5 }
 0x2e2   :  { %v2727_v34 = vcvt.f32.s32 %v1704_v33  ;;  %v2725_v36 = vand.u32 2147483647, %v1704_v33  ;;  %v2730_v38 = vand.u32 2147483648, %v1704_v33 }
 0x2e4   :  { %v2728_v35 = vcvt.s32.f32 %v2727_v34  ;;  %vm2726_vm5 = vcmp.lt.f32.partialorder %v2725_v36, 8388608.0 }
 0x2e6   :  { %v2729_v37 = vand.u32 2147483647, %v2728_v35 }
 0x2e8   :  { %v2731_v41 = vor.u32 %v2730_v38, %v2729_v37 }
 0x2ea   :  { %v2732_v42 = vsel %vm2726_vm5, %v2731_v41, %v1704_v33 }
 0x2eb   :  { %v330_v43 = vsub.f32 %v1704_v33, %v2732_v42 }
 0x2ed   :  { %v331_v44 = vmul.f32 6.2831855, %v330_v43 }
 0x2ef   :  { %2874 = vtanh.f32 %v331_v44 }
 0x2fc   :  { %v2875_v46 = vpop.eup %2874 }
 0x2fd   :  { %v334_v47 = vmul.f32 %v2875_v46, %v333_v45 }
 0x2ff   :  { %v336_v50 = vmul.f32 %v334_v47, %v3195_v40 }
 0x301   :  { %v337_v51 = vadd.f32 %v336_v50, %v335_v49 }
 0x303   :  { %v338_v52 = vmax.f32 %v337_v51, 0.0 }
 0x305   :  { %v339_v53 = vmin.f32 %v338_v52, 1.0 }
 0x307   :  { %v340_v54 = vsel %vm76_vm3, %v3145_v17, %v339_v53 }
 0x308   :  { %2182 = vmatmul.mubr.f32.vlgmr.msra.gmra.mxu1 %v340_v54  ;;  %v417_v23 = vsub.f32 1.0, %v340_v54  ;;  %v419_v26 = vmul.f32 %v340_v54, %v3193_v39 }
 0x309   :  { %2220 = vmatpush3.msra.mxu1 %v3056_v1  ;;  %2251 = vmatprep.mubr.msk.f32.mxu1 %vm3018_vm0, %v3017_v0 }
 0x30a   :  { %2221 = vmatprep.subr.mxu1 %v3017_v0 }
 0x30b   :  { %2222 = vmatpush3.msra.mxu1 %v3058_v2 }
 0x30c   :  { %2223 = vmatprep.subr.mxu1 %v3017_v0 }
 0x30d   :  { %2224 = vmatpush3.msra.mxu1 %v3063_v3 }
 0x30e   :  { %2225 = vmatprep.subr.mxu1 %v3017_v0 }
 0x30f   :  { %2226 = vmatpush3.msra.mxu1 %v3069_v4 }
 0x310   :  { %2227 = vmatprep.subr.mxu1 %v3017_v0 }
 0x311   :  { %2228 = vmatpush3.msra.mxu1 %v3075_v5 }
 0x312   :  { %2229 = vmatprep.subr.mxu1 %v3017_v0 }
 0x313   :  { %2230 = vmatpush3.msra.mxu1 %v3081_v6 }
 0x314   :  { %2231 = vmatprep.subr.mxu1 %v3017_v0 }
 0x315   :  { %2232 = vmatpush3.msra.mxu1 %v3087_v7 }
 0x316   :  { %2233 = vmatprep.subr.mxu1 %v3017_v0 }
 0x317   :  { %2234 = vmatpush3.msra.mxu1 %v3093_v8 }
 0x318   :  { %2235 = vmatprep.subr.mxu1 %v3017_v0 }
 0x319   :  { %2236 = vmatpush3.msra.mxu1 %v3099_v9 }
 0x31a   :  { %2237 = vmatprep.subr.mxu1 %v3017_v0 }
 0x31b   :  { %2238 = vmatpush3.msra.mxu1 %v3105_v10 }
 0x31c   :  { %2239 = vmatprep.subr.mxu1 %v3017_v0 }
 0x31d   :  { %2240 = vmatpush3.msra.mxu1 %v3111_v11 }
 0x31e   :  { %2241 = vmatprep.subr.mxu1 %v3017_v0 }
 0x31f   :  { %2242 = vmatpush3.msra.mxu1 %v3117_v12 }
 0x320   :  { %2243 = vmatprep.subr.mxu1 %v3017_v0 }
 0x321   :  { %2244 = vmatpush3.msra.mxu1 %v3123_v13 }
 0x322   :  { %2245 = vmatprep.subr.mxu1 %v3017_v0 }
 0x323   :  { %2246 = vmatpush3.msra.mxu1 %v3129_v14 }
 0x324   :  { %2247 = vmatprep.subr.mxu1 %v3017_v0 }
 0x325   :  { %2248 = vmatpush3.msra.mxu1 %v3135_v15 }
 0x326   :  { %2249 = vmatprep.subr.mxu1 %v3017_v0 }
 0x327   :  { %2250 = vmatpush3.msra.mxu1 %v3141_v16 }
 0x328   :  { %2289 = vmatprep.subr.mxu1 %v3017_v0 }
 0x3c8   :  { %v407_v55 = vpop.f32.mrf.mxu1 }
 0x3c9   :  { %v408_v56 = vadd.f32 %v407_v55, %v3189_v22 }
 0x3ca   :  { %v2183_v57 = vpop.f32.mrf.mxu1 }
 0x3cb   :  { %v1705_v58 = vclamps-f32 %v408_v56, 0.5 }
 0x3cd   :  { %v2735_v59 = vcvt.f32.s32 %v1705_v58  ;;  %v2733_v61 = vand.u32 2147483647, %v1705_v58  ;;  %v2738_v63 = vand.u32 2147483648, %v1705_v58 }
 0x3cf   :  { %v2736_v60 = vcvt.s32.f32 %v2735_v59  ;;  %vm2734_vm6 = vcmp.lt.f32.partialorder %v2733_v61, 8388608.0 }
 0x3d1   :  { %v2737_v62 = vand.u32 2147483647, %v2736_v60 }
 0x3d3   :  { %v2739_v18 = vor.u32 %v2738_v63, %v2737_v62 }
 0x3d5   :  { %v2740_v19 = vsel %vm2734_vm6, %v2739_v18, %v1705_v58 }
 0x3d6   :  { %v414_v20 = vsub.f32 %v1705_v58, %v2740_v19 }
 0x3d8   :  { %v415_v21 = vmul.f32 6.2831855, %v414_v20 }
 0x3da   :  { %2876 = vtanh.f32 %v415_v21 }
 0x3e7   :  { %v2877_v24 = vpop.eup %2876 }
 0x3e8   :  { %v418_v25 = vmul.f32 %v2877_v24, %v417_v23 }
 0x3ea   :  { %v420_v27 = vmul.f32 %v418_v25, %v3195_v40 }
 0x3ec   :  { %v421_v28 = vadd.f32 %v420_v27, %v419_v26 }
 0x3ee   :  { %v422_v29 = vmax.f32 %v421_v28, 0.0 }
 0x3f0   :  { %v423_v30 = vmin.f32 %v422_v29, 1.0 }
 0x3f2   :  { %v424_v31 = vsel %vm76_vm3, %v3145_v17, %v423_v30 }
 0x3f3   :  { %2217 = vmatmul.mubr.f32.vlgmr.msra.gmra.mxu0 %v424_v31  ;;  %v501_v47 = vsub.f32 1.0, %v424_v31  ;;  %v503_v51 = vmul.f32 %v424_v31, %v3193_v39 }
 0x3f4   :  { %2255 = vmatpush3.msra.mxu0 %v3056_v1  ;;  %2286 = vmatprep.mubr.msk.f32.mxu0 %vm3018_vm0, %v3017_v0 }
 0x3f5   :  { %2256 = vmatprep.subr.mxu0 %v3017_v0 }
 0x3f6   :  { %2257 = vmatpush3.msra.mxu0 %v3058_v2 }
 0x3f7   :  { %2258 = vmatprep.subr.mxu0 %v3017_v0 }
 0x3f8   :  { %2259 = vmatpush3.msra.mxu0 %v3063_v3 }
 0x3f9   :  { %2260 = vmatprep.subr.mxu0 %v3017_v0 }
 0x3fa   :  { %2261 = vmatpush3.msra.mxu0 %v3069_v4 }
 0x3fb   :  { %2262 = vmatprep.subr.mxu0 %v3017_v0 }
 0x3fc   :  { %2263 = vmatpush3.msra.mxu0 %v3075_v5 }
 0x3fd   :  { %2264 = vmatprep.subr.mxu0 %v3017_v0 }
 0x3fe   :  { %2265 = vmatpush3.msra.mxu0 %v3081_v6 }
 0x3ff   :  { %2266 = vmatprep.subr.mxu0 %v3017_v0 }
 0x400   :  { %2267 = vmatpush3.msra.mxu0 %v3087_v7 }
 0x401   :  { %2268 = vmatprep.subr.mxu0 %v3017_v0 }
 0x402   :  { %2269 = vmatpush3.msra.mxu0 %v3093_v8 }
 0x403   :  { %2270 = vmatprep.subr.mxu0 %v3017_v0 }
 0x404   :  { %2271 = vmatpush3.msra.mxu0 %v3099_v9 }
 0x405   :  { %2272 = vmatprep.subr.mxu0 %v3017_v0 }
 0x406   :  { %2273 = vmatpush3.msra.mxu0 %v3105_v10 }
 0x407   :  { %2274 = vmatprep.subr.mxu0 %v3017_v0 }
 0x408   :  { %2275 = vmatpush3.msra.mxu0 %v3111_v11 }
 0x409   :  { %2276 = vmatprep.subr.mxu0 %v3017_v0 }
 0x40a   :  { %2277 = vmatpush3.msra.mxu0 %v3117_v12 }
 0x40b   :  { %2278 = vmatprep.subr.mxu0 %v3017_v0 }
 0x40c   :  { %2279 = vmatpush3.msra.mxu0 %v3123_v13 }
 0x40d   :  { %2280 = vmatprep.subr.mxu0 %v3017_v0 }
 0x40e   :  { %2281 = vmatpush3.msra.mxu0 %v3129_v14 }
 0x40f   :  { %2282 = vmatprep.subr.mxu0 %v3017_v0 }
 0x410   :  { %2283 = vmatpush3.msra.mxu0 %v3135_v15 }
 0x411   :  { %2284 = vmatprep.subr.mxu0 %v3017_v0 }
 0x412   :  { %2285 = vmatpush3.msra.mxu0 %v3141_v16 }
 0x413   :  { %2324 = vmatprep.subr.mxu0 %v3017_v0 }
 0x4b3   :  { %v491_v32 = vpop.f32.mrf.mxu0 }
 0x4b4   :  { %v492_v33 = vadd.f32 %v491_v32, %v3189_v22 }
 0x4b5   :  { %v2218_v34 = vpop.f32.mrf.mxu0 }
 0x4b6   :  { %v1706_v35 = vclamps-f32 %v492_v33, 0.5 }
 0x4b8   :  { %v2743_v36 = vcvt.f32.s32 %v1706_v35  ;;  %v2741_v38 = vand.u32 2147483647, %v1706_v35  ;;  %v2746_v42 = vand.u32 2147483648, %v1706_v35 }
 0x4ba   :  { %v2744_v37 = vcvt.s32.f32 %v2743_v36  ;;  %vm2742_vm7 = vcmp.lt.f32.partialorder %v2741_v38, 8388608.0 }
 0x4bc   :  { %v2745_v41 = vand.u32 2147483647, %v2744_v37 }
 0x4be   :  { %v2747_v43 = vor.u32 %v2746_v42, %v2745_v41 }
 0x4c0   :  { %v2748_v44 = vsel %vm2742_vm7, %v2747_v43, %v1706_v35 }
 0x4c1   :  { %v498_v45 = vsub.f32 %v1706_v35, %v2748_v44 }
 0x4c3   :  { %v499_v46 = vmul.f32 6.2831855, %v498_v45 }
 0x4c5   :  { %2878 = vtanh.f32 %v499_v46 }
 0x4d2   :  { %v2879_v49 = vpop.eup %2878 }
 0x4d3   :  { %v502_v50 = vmul.f32 %v2879_v49, %v501_v47 }
 0x4d5   :  { %v504_v52 = vmul.f32 %v502_v50, %v3195_v40 }
 0x4d7   :  { %v505_v53 = vadd.f32 %v504_v52, %v503_v51 }
 0x4d9   :  { %v506_v54 = vmax.f32 %v505_v53, 0.0 }
 0x4db   :  { %v507_v55 = vmin.f32 %v506_v54, 1.0 }
 0x4dd   :  { %v508_v56 = vsel %vm76_vm3, %v3145_v17, %v507_v55 }
 0x4de   :  { %2252 = vmatmul.mubr.f32.vlgmr.msra.gmra.mxu1 %v508_v56  ;;  %v585_v25 = vsub.f32 1.0, %v508_v56  ;;  %v587_v28 = vmul.f32 %v508_v56, %v3193_v39 }
 0x4df   :  { %2290 = vmatpush3.msra.mxu1 %v3056_v1  ;;  %2321 = vmatprep.mubr.msk.f32.mxu1 %vm3018_vm0, %v3017_v0 }
 0x4e0   :  { %2291 = vmatprep.subr.mxu1 %v3017_v0 }
 0x4e1   :  { %2292 = vmatpush3.msra.mxu1 %v3058_v2 }
 0x4e2   :  { %2293 = vmatprep.subr.mxu1 %v3017_v0 }
 0x4e3   :  { %2294 = vmatpush3.msra.mxu1 %v3063_v3 }
 0x4e4   :  { %2295 = vmatprep.subr.mxu1 %v3017_v0 }
 0x4e5   :  { %2296 = vmatpush3.msra.mxu1 %v3069_v4 }
 0x4e6   :  { %2297 = vmatprep.subr.mxu1 %v3017_v0 }
 0x4e7   :  { %2298 = vmatpush3.msra.mxu1 %v3075_v5 }
 0x4e8   :  { %2299 = vmatprep.subr.mxu1 %v3017_v0 }
 0x4e9   :  { %2300 = vmatpush3.msra.mxu1 %v3081_v6 }
 0x4ea   :  { %2301 = vmatprep.subr.mxu1 %v3017_v0 }
 0x4eb   :  { %2302 = vmatpush3.msra.mxu1 %v3087_v7 }
 0x4ec   :  { %2303 = vmatprep.subr.mxu1 %v3017_v0 }
 0x4ed   :  { %2304 = vmatpush3.msra.mxu1 %v3093_v8 }
 0x4ee   :  { %2305 = vmatprep.subr.mxu1 %v3017_v0 }
 0x4ef   :  { %2306 = vmatpush3.msra.mxu1 %v3099_v9 }
 0x4f0   :  { %2307 = vmatprep.subr.mxu1 %v3017_v0 }
 0x4f1   :  { %2308 = vmatpush3.msra.mxu1 %v3105_v10 }
 0x4f2   :  { %2309 = vmatprep.subr.mxu1 %v3017_v0 }
 0x4f3   :  { %2310 = vmatpush3.msra.mxu1 %v3111_v11 }
 0x4f4   :  { %2311 = vmatprep.subr.mxu1 %v3017_v0 }
 0x4f5   :  { %2312 = vmatpush3.msra.mxu1 %v3117_v12 }
 0x4f6   :  { %2313 = vmatprep.subr.mxu1 %v3017_v0 }
 0x4f7   :  { %2314 = vmatpush3.msra.mxu1 %v3123_v13 }
 0x4f8   :  { %2315 = vmatprep.subr.mxu1 %v3017_v0 }
 0x4f9   :  { %2316 = vmatpush3.msra.mxu1 %v3129_v14 }
 0x4fa   :  { %2317 = vmatprep.subr.mxu1 %v3017_v0 }
 0x4fb   :  { %2318 = vmatpush3.msra.mxu1 %v3135_v15 }
 0x4fc   :  { %2319 = vmatprep.subr.mxu1 %v3017_v0 }
 0x4fd   :  { %2320 = vmatpush3.msra.mxu1 %v3141_v16 }
 0x4fe   :  { %2359 = vmatprep.subr.mxu1 %v3017_v0 }
 0x59e   :  { %v575_v57 = vpop.f32.mrf.mxu1 }
 0x59f   :  { %v576_v58 = vadd.f32 %v575_v57, %v3189_v22 }
 0x5a0   :  { %v2253_v59 = vpop.f32.mrf.mxu1 }
 0x5a1   :  { %v1707_v60 = vclamps-f32 %v576_v58, 0.5 }
 0x5a3   :  { %v2751_v61 = vcvt.f32.s32 %v1707_v60  ;;  %v2749_v63 = vand.u32 2147483647, %v1707_v60  ;;  %v2754_v19 = vand.u32 2147483648, %v1707_v60 }
 0x5a5   :  { %v2752_v62 = vcvt.s32.f32 %v2751_v61  ;;  %vm2750_vm8 = vcmp.lt.f32.partialorder %v2749_v63, 8388608.0 }
 0x5a7   :  { %v2753_v18 = vand.u32 2147483647, %v2752_v62 }
 0x5a9   :  { %v2755_v20 = vor.u32 %v2754_v19, %v2753_v18  ;;  %v3489_v19 = vld [vmem:[#allocation7 + $0x78] sm:$0xff] }
 0x5ab   :  { %v2756_v21 = vsel %vm2750_vm8, %v2755_v20, %v1707_v60  ;;  %v3495_v20 = vld [vmem:[#allocation7 + $0x70] sm:$0xff] }
 0x5ac   :  { %v582_v23 = vsub.f32 %v1707_v60, %v2756_v21  ;;  %v3499_v21 = vld [vmem:[#allocation7 + $0x68] sm:$0xff] }
 0x5ae   :  { %v583_v24 = vmul.f32 6.2831855, %v582_v23  ;;  %v3507_v23 = vld [vmem:[#allocation7 + $0x58] sm:$0xff] }
 0x5b0   :  { %2880 = vtanh.f32 %v583_v24  ;;  %v3511_v24 = vld [vmem:[#allocation7 + $0x50] sm:$0xff] }
 0x5bd   :  { %v2881_v26 = vpop.eup %2880 }
 0x5be   :  { %v586_v27 = vmul.f32 %v2881_v26, %v585_v25  ;;  %v3515_v25 = vld [vmem:[#allocation7 + $0x48] sm:$0xff]  ;;  %v3519_v26 = vld [vmem:[#allocation7 + $0x40] sm:$0xff] }
 0x5c0   :  { %v588_v29 = vmul.f32 %v586_v27, %v3195_v40  ;;  %v3523_v27 = vld [vmem:[#allocation7 + $0x38] sm:$0xff] }
 0x5c2   :  { %v589_v30 = vadd.f32 %v588_v29, %v587_v28  ;;  %v3527_v28 = vld [vmem:[#allocation7 + $0x30] sm:$0xff]  ;;  %v3531_v29 = vld [vmem:[#allocation7 + $0x28] sm:$0xff] }
 0x5c4   :  { %v590_v31 = vmax.f32 %v589_v30, 0.0  ;;  %v3535_v30 = vld [vmem:[#allocation7 + $0x20] sm:$0xff] }
 0x5c6   :  { %v591_v32 = vmin.f32 %v590_v31, 1.0  ;;  %v3539_v31 = vld [vmem:[#allocation7 + $0x18] sm:$0xff] }
 0x5c8   :  { %v592_v33 = vsel %vm76_vm3, %v3145_v17, %v591_v32  ;;  %v3543_v32 = vld [vmem:[#allocation7 + $0x10] sm:$0xff] }
 0x5c9   :  { %2287 = vmatmul.mubr.f32.vlgmr.msra.gmra.mxu0 %v592_v33  ;;  %v669_v50 = vsub.f32 1.0, %v592_v33  ;;  %v671_v53 = vmul.f32 %v592_v33, %v3193_v39  ;;  %v3547_v33 = vld [vmem:[#allocation7 + $0x8] sm:$0xff] }
 0x5ca   :  { %2325 = vmatpush3.msra.mxu0 %v3056_v1  ;;  %2356 = vmatprep.mubr.msk.f32.mxu0 %vm3018_vm0, %v3017_v0 }
 0x5cb   :  { %2326 = vmatprep.subr.mxu0 %v3017_v0 }
 0x5cc   :  { %2327 = vmatpush3.msra.mxu0 %v3058_v2 }
 0x5cd   :  { %2328 = vmatprep.subr.mxu0 %v3017_v0 }
 0x5ce   :  { %2329 = vmatpush3.msra.mxu0 %v3063_v3 }
 0x5cf   :  { %2330 = vmatprep.subr.mxu0 %v3017_v0 }
 0x5d0   :  { %2331 = vmatpush3.msra.mxu0 %v3069_v4 }
 0x5d1   :  { %2332 = vmatprep.subr.mxu0 %v3017_v0 }
 0x5d2   :  { %2333 = vmatpush3.msra.mxu0 %v3075_v5 }
 0x5d3   :  { %2334 = vmatprep.subr.mxu0 %v3017_v0 }
 0x5d4   :  { %2335 = vmatpush3.msra.mxu0 %v3081_v6 }
 0x5d5   :  { %2336 = vmatprep.subr.mxu0 %v3017_v0 }
 0x5d6   :  { %2337 = vmatpush3.msra.mxu0 %v3087_v7 }
 0x5d7   :  { %2338 = vmatprep.subr.mxu0 %v3017_v0 }
 0x5d8   :  { %2339 = vmatpush3.msra.mxu0 %v3093_v8 }
 0x5d9   :  { %2340 = vmatprep.subr.mxu0 %v3017_v0 }
 0x5da   :  { %2341 = vmatpush3.msra.mxu0 %v3099_v9 }
 0x5db   :  { %2342 = vmatprep.subr.mxu0 %v3017_v0 }
 0x5dc   :  { %2343 = vmatpush3.msra.mxu0 %v3105_v10 }
 0x5dd   :  { %2344 = vmatprep.subr.mxu0 %v3017_v0 }
 0x5de   :  { %2345 = vmatpush3.msra.mxu0 %v3111_v11 }
 0x5df   :  { %2346 = vmatprep.subr.mxu0 %v3017_v0 }
 0x5e0   :  { %2347 = vmatpush3.msra.mxu0 %v3117_v12 }
 0x5e1   :  { %2348 = vmatprep.subr.mxu0 %v3017_v0 }
 0x5e2   :  { %2349 = vmatpush3.msra.mxu0 %v3123_v13 }
 0x5e3   :  { %2350 = vmatprep.subr.mxu0 %v3017_v0 }
 0x5e4   :  { %2351 = vmatpush3.msra.mxu0 %v3129_v14 }
 0x5e5   :  { %2352 = vmatprep.subr.mxu0 %v3017_v0 }
 0x5e6   :  { %2353 = vmatpush3.msra.mxu0 %v3135_v15 }
 0x5e7   :  { %2354 = vmatprep.subr.mxu0 %v3017_v0 }
 0x5e8   :  { %2355 = vmatpush3.msra.mxu0 %v3141_v16 }
 0x5e9   :  { %2394 = vmatprep.subr.mxu0 %v3017_v0 }
 0x689   :  { %v659_v34 = vpop.f32.mrf.mxu0 }
 0x68a   :  { %v660_v35 = vadd.f32 %v659_v34, %v3189_v22  ;;  %v3551_v34 = vld [vmem:[#allocation7] sm:$0xff] }
 0x68b   :  { %v2288_v36 = vpop.f32.mrf.mxu0 }
 0x68c   :  { %v1708_v37 = vclamps-f32 %v660_v35, 0.5 }
 0x68e   :  { %v2759_v38 = vcvt.f32.s32 %v1708_v37  ;;  %v2757_v42 = vand.u32 2147483647, %v1708_v37  ;;  %v2762_v44 = vand.u32 2147483648, %v1708_v37 }
 0x690   :  { %v2760_v41 = vcvt.s32.f32 %v2759_v38  ;;  %vm2758_vm9 = vcmp.lt.f32.partialorder %v2757_v42, 8388608.0 }
 0x692   :  { %v2761_v43 = vand.u32 2147483647, %v2760_v41 }
 0x694   :  { %v2763_v45 = vor.u32 %v2762_v44, %v2761_v43 }
 0x696   :  { %v2764_v46 = vsel %vm2758_vm9, %v2763_v45, %v1708_v37 }
 0x697   :  { %v666_v47 = vsub.f32 %v1708_v37, %v2764_v46 }
 0x699   :  { %v667_v49 = vmul.f32 6.2831855, %v666_v47 }
 0x69b   :  { %2882 = vtanh.f32 %v667_v49 }
 0x6a8   :  { %v2883_v51 = vpop.eup %2882 }
 0x6a9   :  { %v670_v52 = vmul.f32 %v2883_v51, %v669_v50 }
 0x6ab   :  { %v672_v54 = vmul.f32 %v670_v52, %v3195_v40 }
 0x6ad   :  { %v673_v55 = vadd.f32 %v672_v54, %v671_v53 }
 0x6af   :  { %v674_v56 = vmax.f32 %v673_v55, 0.0 }
 0x6b1   :  { %v675_v57 = vmin.f32 %v674_v56, 1.0 }
 0x6b3   :  { %v676_v58 = vsel %vm76_vm3, %v3145_v17, %v675_v57 }
 0x6b4   :  { %2322 = vmatmul.mubr.f32.vlgmr.msra.gmra.mxu1 %v676_v58  ;;  %v755_v59 = vmul.f32 %v676_v58, %v3193_v39 }
 0x6b5   :  { %2360 = vmatpush3.msra.mxu1 %v3056_v1  ;;  %2391 = vmatprep.mubr.msk.f32.mxu1 %vm3018_vm0, %v3017_v0 }
 0x6b6   :  { %2361 = vmatprep.subr.mxu1 %v3017_v0 }
 0x6b7   :  { %2362 = vmatpush3.msra.mxu1 %v3058_v2 }
 0x6b8   :  { %2363 = vmatprep.subr.mxu1 %v3017_v0 }
 0x6b9   :  { %2364 = vmatpush3.msra.mxu1 %v3063_v3 }
 0x6ba   :  { %2365 = vmatprep.subr.mxu1 %v3017_v0 }
 0x6bb   :  { %2366 = vmatpush3.msra.mxu1 %v3069_v4 }
 0x6bc   :  { %2367 = vmatprep.subr.mxu1 %v3017_v0 }
 0x6bd   :  { %2368 = vmatpush3.msra.mxu1 %v3075_v5 }
 0x6be   :  { %2369 = vmatprep.subr.mxu1 %v3017_v0 }
 0x6bf   :  { %2370 = vmatpush3.msra.mxu1 %v3081_v6 }
 0x6c0   :  { %2371 = vmatprep.subr.mxu1 %v3017_v0 }
 0x6c1   :  { %2372 = vmatpush3.msra.mxu1 %v3087_v7 }
 0x6c2   :  { %2373 = vmatprep.subr.mxu1 %v3017_v0 }
 0x6c3   :  { %2374 = vmatpush3.msra.mxu1 %v3093_v8 }
 0x6c4   :  { %2375 = vmatprep.subr.mxu1 %v3017_v0 }
 0x6c5   :  { %2376 = vmatpush3.msra.mxu1 %v3099_v9 }
 0x6c6   :  { %2377 = vmatprep.subr.mxu1 %v3017_v0 }
 0x6c7   :  { %2378 = vmatpush3.msra.mxu1 %v3105_v10 }
 0x6c8   :  { %2379 = vmatprep.subr.mxu1 %v3017_v0 }
 0x6c9   :  { %2380 = vmatpush3.msra.mxu1 %v3111_v11 }
 0x6ca   :  { %2381 = vmatprep.subr.mxu1 %v3017_v0 }
 0x6cb   :  { %2382 = vmatpush3.msra.mxu1 %v3117_v12 }
 0x6cc   :  { %2383 = vmatprep.subr.mxu1 %v3017_v0 }
 0x6cd   :  { %2384 = vmatpush3.msra.mxu1 %v3123_v13 }
 0x6ce   :  { %2385 = vmatprep.subr.mxu1 %v3017_v0 }
 0x6cf   :  { %2386 = vmatpush3.msra.mxu1 %v3129_v14  ;;  %v753_v14 = vsub.f32 1.0, %v676_v58 }
 0x6d0   :  { %2387 = vmatprep.subr.mxu1 %v3017_v0 }
 0x6d1   :  { %2388 = vmatpush3.msra.mxu1 %v3135_v15 }
 0x6d2   :  { %2389 = vmatprep.subr.mxu1 %v3017_v0 }
 0x6d3   :  { %2390 = vmatpush3.msra.mxu1 %v3141_v16 }
 0x6d4   :  { %2429 = vmatprep.subr.mxu1 %v3017_v0 }
 0x774   :  { %v743_v1 = vpop.f32.mrf.mxu1 }
 0x775   :  { %v744_v2 = vadd.f32 %v743_v1, %v3189_v22  ;;  %v3560_v1 = vld [vmem:[#allocation2] sm:$0xff] }
 0x776   :  { %v2323_v3 = vpop.f32.mrf.mxu1 }
 0x777   :  { %v1709_v4 = vclamps-f32 %v744_v2, 0.5 }
 0x779   :  { %v2767_v5 = vcvt.f32.s32 %v1709_v4  ;;  %v2765_v7 = vand.u32 2147483647, %v1709_v4  ;;  %v2770_v9 = vand.u32 2147483648, %v1709_v4 }
 0x77b   :  { %v2768_v6 = vcvt.s32.f32 %v2767_v5  ;;  %vm2766_vm10 = vcmp.lt.f32.partialorder %v2765_v7, 8388608.0 }
 0x77d   :  { %v2769_v8 = vand.u32 2147483647, %v2768_v6 }
 0x77f   :  { %v2771_v10 = vor.u32 %v2770_v9, %v2769_v8 }
 0x781   :  { %v2772_v11 = vsel %vm2766_vm10, %v2771_v10, %v1709_v4 }
 0x782   :  { %v750_v12 = vsub.f32 %v1709_v4, %v2772_v11 }
 0x784   :  { %v751_v13 = vmul.f32 6.2831855, %v750_v12 }
 0x786   :  { %2884 = vtanh.f32 %v751_v13 }
 0x793   :  { %v2885_v15 = vpop.eup %2884 }
 0x794   :  { %v754_v16 = vmul.f32 %v2885_v15, %v753_v14 }
 0x796   :  { %v756_v60 = vmul.f32 %v754_v16, %v3195_v40 }
 0x798   :  { %v757_v61 = vadd.f32 %v756_v60, %v755_v59 }
 0x79a   :  { %v758_v62 = vmax.f32 %v757_v61, 0.0 }
 0x79c   :  { %v759_v63 = vmin.f32 %v758_v62, 1.0 }
 0x79e   :  { %v3486_v18 = vsel %vm76_vm3, %v3145_v17, %v759_v63  ;;  %v3503_v17 = vld [vmem:[#allocation7 + $0x60] sm:$0xff] }
 0x79f   :  { %2357 = vmatmul.mubr.f32.vlgmr.msra.gmra.mxu0 %v3486_v18  ;;  %v837_v51 = vsub.f32 1.0, %v3486_v18  ;;  %v839_v54 = vmul.f32 %v3486_v18, %v3193_v39 }
 0x7a0   :  { %2395 = vmatpush3.msra.mxu0 %v3489_v19  ;;  %2426 = vmatprep.mubr.msk.f32.mxu0 %vm3018_vm0, %v3017_v0 }
 0x7a1   :  { %2396 = vmatprep.subr.mxu0 %v3017_v0 }
 0x7a2   :  { %2397 = vmatpush3.msra.mxu0 %v3495_v20 }
 0x7a3   :  { %2398 = vmatprep.subr.mxu0 %v3017_v0 }
 0x7a4   :  { %2399 = vmatpush3.msra.mxu0 %v3499_v21 }
 0x7a5   :  { %2400 = vmatprep.subr.mxu0 %v3017_v0 }
 0x7a6   :  { %2401 = vmatpush3.msra.mxu0 %v3503_v17 }
 0x7a7   :  { %2402 = vmatprep.subr.mxu0 %v3017_v0 }
 0x7a8   :  { %2403 = vmatpush3.msra.mxu0 %v3507_v23 }
 0x7a9   :  { %2404 = vmatprep.subr.mxu0 %v3017_v0 }
 0x7aa   :  { %2405 = vmatpush3.msra.mxu0 %v3511_v24 }
 0x7ab   :  { %2406 = vmatprep.subr.mxu0 %v3017_v0 }
 0x7ac   :  { %2407 = vmatpush3.msra.mxu0 %v3515_v25 }
 0x7ad   :  { %2408 = vmatprep.subr.mxu0 %v3017_v0 }
 0x7ae   :  { %2409 = vmatpush3.msra.mxu0 %v3519_v26 }
 0x7af   :  { %2410 = vmatprep.subr.mxu0 %v3017_v0 }
 0x7b0   :  { %2411 = vmatpush3.msra.mxu0 %v3523_v27 }
 0x7b1   :  { %2412 = vmatprep.subr.mxu0 %v3017_v0 }
 0x7b2   :  { %2413 = vmatpush3.msra.mxu0 %v3527_v28 }
 0x7b3   :  { %2414 = vmatprep.subr.mxu0 %v3017_v0 }
 0x7b4   :  { %2415 = vmatpush3.msra.mxu0 %v3531_v29 }
 0x7b5   :  { %2416 = vmatprep.subr.mxu0 %v3017_v0 }
 0x7b6   :  { %2417 = vmatpush3.msra.mxu0 %v3535_v30 }
 0x7b7   :  { %2418 = vmatprep.subr.mxu0 %v3017_v0 }
 0x7b8   :  { %2419 = vmatpush3.msra.mxu0 %v3539_v31 }
 0x7b9   :  { %2420 = vmatprep.subr.mxu0 %v3017_v0 }
 0x7ba   :  { %2421 = vmatpush3.msra.mxu0 %v3543_v32 }
 0x7bb   :  { %2422 = vmatprep.subr.mxu0 %v3017_v0 }
 0x7bc   :  { %2423 = vmatpush3.msra.mxu0 %v3547_v33 }
 0x7bd   :  { %2424 = vmatprep.subr.mxu0 %v3017_v0 }
 0x7be   :  { %2425 = vmatpush3.msra.mxu0 %v3551_v34 }
 0x7bf   :  { %2464 = vmatprep.subr.mxu0 %v3017_v0 }
 0x85f   :  { %v827_v35 = vpop.f32.mrf.mxu0 }
 0x860   :  { %v828_v36 = vadd.f32 %v827_v35, %v3189_v22 }
 0x861   :  { %v2358_v37 = vpop.f32.mrf.mxu0 }
 0x862   :  { %v1710_v38 = vclamps-f32 %v828_v36, 0.5 }
 0x864   :  { %v2775_v41 = vcvt.f32.s32 %v1710_v38  ;;  %v2773_v43 = vand.u32 2147483647, %v1710_v38  ;;  %v2778_v45 = vand.u32 2147483648, %v1710_v38 }
 0x866   :  { %v2776_v42 = vcvt.s32.f32 %v2775_v41  ;;  %vm2774_vm11 = vcmp.lt.f32.partialorder %v2773_v43, 8388608.0 }
 0x868   :  { %v2777_v44 = vand.u32 2147483647, %v2776_v42 }
 0x86a   :  { %v2779_v46 = vor.u32 %v2778_v45, %v2777_v44 }
 0x86c   :  { %v2780_v47 = vsel %vm2774_vm11, %v2779_v46, %v1710_v38 }
 0x86d   :  { %v834_v49 = vsub.f32 %v1710_v38, %v2780_v47 }
 0x86f   :  { %v835_v50 = vmul.f32 6.2831855, %v834_v49 }
 0x871   :  { %2886 = vtanh.f32 %v835_v50 }
 0x87e   :  { %v2887_v52 = vpop.eup %2886 }
 0x87f   :  { %v838_v53 = vmul.f32 %v2887_v52, %v837_v51 }
 0x881   :  { %v840_v55 = vmul.f32 %v838_v53, %v3195_v40 }
 0x883   :  { %v841_v56 = vadd.f32 %v840_v55, %v839_v54 }
 0x885   :  { %v842_v57 = vmax.f32 %v841_v56, 0.0 }
 0x887   :  { %v843_v58 = vmin.f32 %v842_v57, 1.0 }
 0x889   :  { %v844_v2 = vsel %vm76_vm3, %v3560_v1, %v843_v58 }
 0x88a   :  { %2392 = vmatmul.mubr.f32.vlgmr.msra.gmra.mxu1 %v844_v2  ;;  %v921_v16 = vsub.f32 1.0, %v844_v2  ;;  %v923_v61 = vmul.f32 %v844_v2, %v3193_v39 }
 0x88b   :  { %2430 = vmatpush3.msra.mxu1 %v3489_v19  ;;  %2461 = vmatprep.mubr.msk.f32.mxu1 %vm3018_vm0, %v3017_v0 }
 0x88c   :  { %2431 = vmatprep.subr.mxu1 %v3017_v0 }
 0x88d   :  { %2432 = vmatpush3.msra.mxu1 %v3495_v20 }
 0x88e   :  { %2433 = vmatprep.subr.mxu1 %v3017_v0 }
 0x88f   :  { %2434 = vmatpush3.msra.mxu1 %v3499_v21 }
 0x890   :  { %2435 = vmatprep.subr.mxu1 %v3017_v0 }
 0x891   :  { %2436 = vmatpush3.msra.mxu1 %v3503_v17 }
 0x892   :  { %2437 = vmatprep.subr.mxu1 %v3017_v0 }
 0x893   :  { %2438 = vmatpush3.msra.mxu1 %v3507_v23 }
 0x894   :  { %2439 = vmatprep.subr.mxu1 %v3017_v0 }
 0x895   :  { %2440 = vmatpush3.msra.mxu1 %v3511_v24 }
 0x896   :  { %2441 = vmatprep.subr.mxu1 %v3017_v0 }
 0x897   :  { %2442 = vmatpush3.msra.mxu1 %v3515_v25 }
 0x898   :  { %2443 = vmatprep.subr.mxu1 %v3017_v0 }
 0x899   :  { %2444 = vmatpush3.msra.mxu1 %v3519_v26 }
 0x89a   :  { %2445 = vmatprep.subr.mxu1 %v3017_v0 }
 0x89b   :  { %2446 = vmatpush3.msra.mxu1 %v3523_v27 }
 0x89c   :  { %2447 = vmatprep.subr.mxu1 %v3017_v0 }
 0x89d   :  { %2448 = vmatpush3.msra.mxu1 %v3527_v28 }
 0x89e   :  { %2449 = vmatprep.subr.mxu1 %v3017_v0 }
 0x89f   :  { %2450 = vmatpush3.msra.mxu1 %v3531_v29 }
 0x8a0   :  { %2451 = vmatprep.subr.mxu1 %v3017_v0 }
 0x8a1   :  { %2452 = vmatpush3.msra.mxu1 %v3535_v30 }
 0x8a2   :  { %2453 = vmatprep.subr.mxu1 %v3017_v0 }
 0x8a3   :  { %2454 = vmatpush3.msra.mxu1 %v3539_v31 }
 0x8a4   :  { %2455 = vmatprep.subr.mxu1 %v3017_v0 }
 0x8a5   :  { %2456 = vmatpush3.msra.mxu1 %v3543_v32 }
 0x8a6   :  { %2457 = vmatprep.subr.mxu1 %v3017_v0 }
 0x8a7   :  { %2458 = vmatpush3.msra.mxu1 %v3547_v33 }
 0x8a8   :  { %2459 = vmatprep.subr.mxu1 %v3017_v0 }
 0x8a9   :  { %2460 = vmatpush3.msra.mxu1 %v3551_v34 }
 0x8aa   :  { %2499 = vmatprep.subr.mxu1 %v3017_v0 }
 0x94a   :  { %v911_v3 = vpop.f32.mrf.mxu1 }
 0x94b   :  { %v912_v4 = vadd.f32 %v911_v3, %v3189_v22 }
 0x94c   :  { %v2393_v5 = vpop.f32.mrf.mxu1 }
 0x94d   :  { %v1711_v6 = vclamps-f32 %v912_v4, 0.5 }
 0x94f   :  { %v2783_v7 = vcvt.f32.s32 %v1711_v6  ;;  %v2781_v9 = vand.u32 2147483647, %v1711_v6  ;;  %v2786_v11 = vand.u32 2147483648, %v1711_v6 }
 0x951   :  { %v2784_v8 = vcvt.s32.f32 %v2783_v7  ;;  %vm2782_vm12 = vcmp.lt.f32.partialorder %v2781_v9, 8388608.0 }
 0x953   :  { %v2785_v10 = vand.u32 2147483647, %v2784_v8 }
 0x955   :  { %v2787_v12 = vor.u32 %v2786_v11, %v2785_v10 }
 0x957   :  { %v2788_v13 = vsel %vm2782_vm12, %v2787_v12, %v1711_v6 }
 0x958   :  { %v918_v14 = vsub.f32 %v1711_v6, %v2788_v13 }
 0x95a   :  { %v919_v15 = vmul.f32 6.2831855, %v918_v14 }
 0x95c   :  { %2888 = vtanh.f32 %v919_v15 }
 0x969   :  { %v2889_v59 = vpop.eup %2888 }
 0x96a   :  { %v922_v60 = vmul.f32 %v2889_v59, %v921_v16 }
 0x96c   :  { %v924_v62 = vmul.f32 %v922_v60, %v3195_v40 }
 0x96e   :  { %v925_v63 = vadd.f32 %v924_v62, %v923_v61 }
 0x970   :  { %v926_v18 = vmax.f32 %v925_v63, 0.0 }
 0x972   :  { %v927_v35 = vmin.f32 %v926_v18, 1.0 }
 0x974   :  { %v928_v36 = vsel %vm76_vm3, %v3560_v1, %v927_v35 }
 0x975   :  { %2427 = vmatmul.mubr.f32.vlgmr.msra.gmra.mxu0 %v928_v36  ;;  %v1005_v53 = vsub.f32 1.0, %v928_v36  ;;  %v1007_v56 = vmul.f32 %v928_v36, %v3193_v39 }
 0x976   :  { %2465 = vmatpush3.msra.mxu0 %v3489_v19  ;;  %2496 = vmatprep.mubr.msk.f32.mxu0 %vm3018_vm0, %v3017_v0 }
 0x977   :  { %2466 = vmatprep.subr.mxu0 %v3017_v0 }
 0x978   :  { %2467 = vmatpush3.msra.mxu0 %v3495_v20 }
 0x979   :  { %2468 = vmatprep.subr.mxu0 %v3017_v0 }
 0x97a   :  { %2469 = vmatpush3.msra.mxu0 %v3499_v21 }
 0x97b   :  { %2470 = vmatprep.subr.mxu0 %v3017_v0 }
 0x97c   :  { %2471 = vmatpush3.msra.mxu0 %v3503_v17 }
 0x97d   :  { %2472 = vmatprep.subr.mxu0 %v3017_v0 }
 0x97e   :  { %2473 = vmatpush3.msra.mxu0 %v3507_v23 }
 0x97f   :  { %2474 = vmatprep.subr.mxu0 %v3017_v0 }
 0x980   :  { %2475 = vmatpush3.msra.mxu0 %v3511_v24 }
 0x981   :  { %2476 = vmatprep.subr.mxu0 %v3017_v0 }
 0x982   :  { %2477 = vmatpush3.msra.mxu0 %v3515_v25 }
 0x983   :  { %2478 = vmatprep.subr.mxu0 %v3017_v0 }
 0x984   :  { %2479 = vmatpush3.msra.mxu0 %v3519_v26 }
 0x985   :  { %2480 = vmatprep.subr.mxu0 %v3017_v0 }
 0x986   :  { %2481 = vmatpush3.msra.mxu0 %v3523_v27 }
 0x987   :  { %2482 = vmatprep.subr.mxu0 %v3017_v0 }
 0x988   :  { %2483 = vmatpush3.msra.mxu0 %v3527_v28 }
 0x989   :  { %2484 = vmatprep.subr.mxu0 %v3017_v0 }
 0x98a   :  { %2485 = vmatpush3.msra.mxu0 %v3531_v29 }
 0x98b   :  { %2486 = vmatprep.subr.mxu0 %v3017_v0 }
 0x98c   :  { %2487 = vmatpush3.msra.mxu0 %v3535_v30 }
 0x98d   :  { %2488 = vmatprep.subr.mxu0 %v3017_v0 }
 0x98e   :  { %2489 = vmatpush3.msra.mxu0 %v3539_v31 }
 0x98f   :  { %2490 = vmatprep.subr.mxu0 %v3017_v0 }
 0x990   :  { %2491 = vmatpush3.msra.mxu0 %v3543_v32 }
 0x991   :  { %2492 = vmatprep.subr.mxu0 %v3017_v0 }
 0x992   :  { %2493 = vmatpush3.msra.mxu0 %v3547_v33 }
 0x993   :  { %2494 = vmatprep.subr.mxu0 %v3017_v0 }
 0x994   :  { %2495 = vmatpush3.msra.mxu0 %v3551_v34 }
 0x995   :  { %2534 = vmatprep.subr.mxu0 %v3017_v0 }
 0xa35   :  { %v995_v37 = vpop.f32.mrf.mxu0 }
 0xa36   :  { %v996_v38 = vadd.f32 %v995_v37, %v3189_v22 }
 0xa37   :  { %v2428_v41 = vpop.f32.mrf.mxu0 }
 0xa38   :  { %v1712_v42 = vclamps-f32 %v996_v38, 0.5 }
 0xa3a   :  { %v2791_v43 = vcvt.f32.s32 %v1712_v42  ;;  %v2789_v45 = vand.u32 2147483647, %v1712_v42  ;;  %v2794_v47 = vand.u32 2147483648, %v1712_v42 }
 0xa3c   :  { %v2792_v44 = vcvt.s32.f32 %v2791_v43  ;;  %vm2790_vm13 = vcmp.lt.f32.partialorder %v2789_v45, 8388608.0 }
 0xa3e   :  { %v2793_v46 = vand.u32 2147483647, %v2792_v44 }
 0xa40   :  { %v2795_v49 = vor.u32 %v2794_v47, %v2793_v46 }
 0xa42   :  { %v2796_v50 = vsel %vm2790_vm13, %v2795_v49, %v1712_v42 }
 0xa43   :  { %v1002_v51 = vsub.f32 %v1712_v42, %v2796_v50 }
 0xa45   :  { %v1003_v52 = vmul.f32 6.2831855, %v1002_v51 }
 0xa47   :  { %2890 = vtanh.f32 %v1003_v52 }
 0xa54   :  { %v2891_v54 = vpop.eup %2890 }
 0xa55   :  { %v1006_v55 = vmul.f32 %v2891_v54, %v1005_v53 }
 0xa57   :  { %v1008_v57 = vmul.f32 %v1006_v55, %v3195_v40 }
 0xa59   :  { %v1009_v58 = vadd.f32 %v1008_v57, %v1007_v56 }
 0xa5b   :  { %v1010_v2 = vmax.f32 %v1009_v58, 0.0 }
 0xa5d   :  { %v1011_v3 = vmin.f32 %v1010_v2, 1.0 }
 0xa5f   :  { %v1012_v4 = vsel %vm76_vm3, %v3560_v1, %v1011_v3 }
 0xa60   :  { %2462 = vmatmul.mubr.f32.vlgmr.msra.gmra.mxu1 %v1012_v4  ;;  %v1089_v60 = vsub.f32 1.0, %v1012_v4  ;;  %v1091_v63 = vmul.f32 %v1012_v4, %v3193_v39 }
 0xa61   :  { %2500 = vmatpush3.msra.mxu1 %v3489_v19  ;;  %2531 = vmatprep.mubr.msk.f32.mxu1 %vm3018_vm0, %v3017_v0 }
 0xa62   :  { %2501 = vmatprep.subr.mxu1 %v3017_v0 }
 0xa63   :  { %2502 = vmatpush3.msra.mxu1 %v3495_v20 }
 0xa64   :  { %2503 = vmatprep.subr.mxu1 %v3017_v0 }
 0xa65   :  { %2504 = vmatpush3.msra.mxu1 %v3499_v21 }
 0xa66   :  { %2505 = vmatprep.subr.mxu1 %v3017_v0 }
 0xa67   :  { %2506 = vmatpush3.msra.mxu1 %v3503_v17 }
 0xa68   :  { %2507 = vmatprep.subr.mxu1 %v3017_v0 }
 0xa69   :  { %2508 = vmatpush3.msra.mxu1 %v3507_v23 }
 0xa6a   :  { %2509 = vmatprep.subr.mxu1 %v3017_v0 }
 0xa6b   :  { %2510 = vmatpush3.msra.mxu1 %v3511_v24 }
 0xa6c   :  { %2511 = vmatprep.subr.mxu1 %v3017_v0 }
 0xa6d   :  { %2512 = vmatpush3.msra.mxu1 %v3515_v25 }
 0xa6e   :  { %2513 = vmatprep.subr.mxu1 %v3017_v0 }
 0xa6f   :  { %2514 = vmatpush3.msra.mxu1 %v3519_v26 }
 0xa70   :  { %2515 = vmatprep.subr.mxu1 %v3017_v0 }
 0xa71   :  { %2516 = vmatpush3.msra.mxu1 %v3523_v27 }
 0xa72   :  { %2517 = vmatprep.subr.mxu1 %v3017_v0 }
 0xa73   :  { %2518 = vmatpush3.msra.mxu1 %v3527_v28 }
 0xa74   :  { %2519 = vmatprep.subr.mxu1 %v3017_v0 }
 0xa75   :  { %2520 = vmatpush3.msra.mxu1 %v3531_v29 }
 0xa76   :  { %2521 = vmatprep.subr.mxu1 %v3017_v0 }
 0xa77   :  { %2522 = vmatpush3.msra.mxu1 %v3535_v30 }
 0xa78   :  { %2523 = vmatprep.subr.mxu1 %v3017_v0 }
 0xa79   :  { %2524 = vmatpush3.msra.mxu1 %v3539_v31 }
 0xa7a   :  { %2525 = vmatprep.subr.mxu1 %v3017_v0 }
 0xa7b   :  { %2526 = vmatpush3.msra.mxu1 %v3543_v32 }
 0xa7c   :  { %2527 = vmatprep.subr.mxu1 %v3017_v0 }
 0xa7d   :  { %2528 = vmatpush3.msra.mxu1 %v3547_v33 }
 0xa7e   :  { %2529 = vmatprep.subr.mxu1 %v3017_v0 }
 0xa7f   :  { %2530 = vmatpush3.msra.mxu1 %v3551_v34 }
 0xa80   :  { %2569 = vmatprep.subr.mxu1 %v3017_v0 }
 0xb20   :  { %v1079_v5 = vpop.f32.mrf.mxu1 }
 0xb21   :  { %v1080_v6 = vadd.f32 %v1079_v5, %v3189_v22 }
 0xb22   :  { %v2463_v7 = vpop.f32.mrf.mxu1 }
 0xb23   :  { %v1713_v8 = vclamps-f32 %v1080_v6, 0.5 }
 0xb25   :  { %v2799_v9 = vcvt.f32.s32 %v1713_v8  ;;  %v2797_v11 = vand.u32 2147483647, %v1713_v8  ;;  %v2802_v13 = vand.u32 2147483648, %v1713_v8 }
 0xb27   :  { %v2800_v10 = vcvt.s32.f32 %v2799_v9  ;;  %vm2798_vm14 = vcmp.lt.f32.partialorder %v2797_v11, 8388608.0 }
 0xb29   :  { %v2801_v12 = vand.u32 2147483647, %v2800_v10 }
 0xb2b   :  { %v2803_v14 = vor.u32 %v2802_v13, %v2801_v12 }
 0xb2d   :  { %v2804_v15 = vsel %vm2798_vm14, %v2803_v14, %v1713_v8 }
 0xb2e   :  { %v1086_v16 = vsub.f32 %v1713_v8, %v2804_v15 }
 0xb30   :  { %v1087_v59 = vmul.f32 6.2831855, %v1086_v16 }
 0xb32   :  { %2892 = vtanh.f32 %v1087_v59 }
 0xb3f   :  { %v2893_v61 = vpop.eup %2892 }
 0xb40   :  { %v1090_v62 = vmul.f32 %v2893_v61, %v1089_v60 }
 0xb42   :  { %v1092_v18 = vmul.f32 %v1090_v62, %v3195_v40 }
 0xb44   :  { %v1093_v35 = vadd.f32 %v1092_v18, %v1091_v63 }
 0xb46   :  { %v1094_v36 = vmax.f32 %v1093_v35, 0.0 }
 0xb48   :  { %v1095_v37 = vmin.f32 %v1094_v36, 1.0 }
 0xb4a   :  { %v1096_v38 = vsel %vm76_vm3, %v3560_v1, %v1095_v37 }
 0xb4b   :  { %2497 = vmatmul.mubr.f32.vlgmr.msra.gmra.mxu0 %v1096_v38  ;;  %v1173_v55 = vsub.f32 1.0, %v1096_v38  ;;  %v1175_v58 = vmul.f32 %v1096_v38, %v3193_v39 }
 0xb4c   :  { %2535 = vmatpush3.msra.mxu0 %v3489_v19  ;;  %2566 = vmatprep.mubr.msk.f32.mxu0 %vm3018_vm0, %v3017_v0 }
 0xb4d   :  { %2536 = vmatprep.subr.mxu0 %v3017_v0 }
 0xb4e   :  { %2537 = vmatpush3.msra.mxu0 %v3495_v20 }
 0xb4f   :  { %2538 = vmatprep.subr.mxu0 %v3017_v0 }
 0xb50   :  { %2539 = vmatpush3.msra.mxu0 %v3499_v21 }
 0xb51   :  { %2540 = vmatprep.subr.mxu0 %v3017_v0 }
 0xb52   :  { %2541 = vmatpush3.msra.mxu0 %v3503_v17 }
 0xb53   :  { %2542 = vmatprep.subr.mxu0 %v3017_v0 }
 0xb54   :  { %2543 = vmatpush3.msra.mxu0 %v3507_v23 }
 0xb55   :  { %2544 = vmatprep.subr.mxu0 %v3017_v0 }
 0xb56   :  { %2545 = vmatpush3.msra.mxu0 %v3511_v24 }
 0xb57   :  { %2546 = vmatprep.subr.mxu0 %v3017_v0 }
 0xb58   :  { %2547 = vmatpush3.msra.mxu0 %v3515_v25 }
 0xb59   :  { %2548 = vmatprep.subr.mxu0 %v3017_v0 }
 0xb5a   :  { %2549 = vmatpush3.msra.mxu0 %v3519_v26 }
 0xb5b   :  { %2550 = vmatprep.subr.mxu0 %v3017_v0 }
 0xb5c   :  { %2551 = vmatpush3.msra.mxu0 %v3523_v27 }
 0xb5d   :  { %2552 = vmatprep.subr.mxu0 %v3017_v0 }
 0xb5e   :  { %2553 = vmatpush3.msra.mxu0 %v3527_v28 }
 0xb5f   :  { %2554 = vmatprep.subr.mxu0 %v3017_v0 }
 0xb60   :  { %2555 = vmatpush3.msra.mxu0 %v3531_v29 }
 0xb61   :  { %2556 = vmatprep.subr.mxu0 %v3017_v0 }
 0xb62   :  { %2557 = vmatpush3.msra.mxu0 %v3535_v30 }
 0xb63   :  { %2558 = vmatprep.subr.mxu0 %v3017_v0 }
 0xb64   :  { %2559 = vmatpush3.msra.mxu0 %v3539_v31 }
 0xb65   :  { %2560 = vmatprep.subr.mxu0 %v3017_v0 }
 0xb66   :  { %2561 = vmatpush3.msra.mxu0 %v3543_v32 }
 0xb67   :  { %2562 = vmatprep.subr.mxu0 %v3017_v0 }
 0xb68   :  { %2563 = vmatpush3.msra.mxu0 %v3547_v33 }
 0xb69   :  { %2564 = vmatprep.subr.mxu0 %v3017_v0 }
 0xb6a   :  { %2565 = vmatpush3.msra.mxu0 %v3551_v34 }
 0xb6b   :  { %2604 = vmatprep.subr.mxu0 %v3017_v0 }
 0xc0b   :  { %v1163_v41 = vpop.f32.mrf.mxu0 }
 0xc0c   :  { %v1164_v42 = vadd.f32 %v1163_v41, %v3189_v22 }
 0xc0d   :  { %v2498_v43 = vpop.f32.mrf.mxu0 }
 0xc0e   :  { %v1714_v44 = vclamps-f32 %v1164_v42, 0.5 }
 0xc10   :  { %v2807_v45 = vcvt.f32.s32 %v1714_v44  ;;  %v2805_v47 = vand.u32 2147483647, %v1714_v44  ;;  %v2810_v50 = vand.u32 2147483648, %v1714_v44 }
 0xc12   :  { %v2808_v46 = vcvt.s32.f32 %v2807_v45  ;;  %vm2806_vm15 = vcmp.lt.f32.partialorder %v2805_v47, 8388608.0 }
 0xc14   :  { %v2809_v49 = vand.u32 2147483647, %v2808_v46 }
 0xc16   :  { %v2811_v51 = vor.u32 %v2810_v50, %v2809_v49 }
 0xc18   :  { %v2812_v52 = vsel %vm2806_vm15, %v2811_v51, %v1714_v44 }
 0xc19   :  { %v1170_v53 = vsub.f32 %v1714_v44, %v2812_v52 }
 0xc1b   :  { %v1171_v54 = vmul.f32 6.2831855, %v1170_v53 }
 0xc1d   :  { %2894 = vtanh.f32 %v1171_v54 }
 0xc2a   :  { %v2895_v56 = vpop.eup %2894 }
 0xc2b   :  { %v1174_v57 = vmul.f32 %v2895_v56, %v1173_v55 }
 0xc2d   :  { %v1176_v2 = vmul.f32 %v1174_v57, %v3195_v40 }
 0xc2f   :  { %v1177_v3 = vadd.f32 %v1176_v2, %v1175_v58 }
 0xc31   :  { %v1178_v4 = vmax.f32 %v1177_v3, 0.0 }
 0xc33   :  { %v1179_v5 = vmin.f32 %v1178_v4, 1.0 }
 0xc35   :  { %v1180_v6 = vsel %vm76_vm3, %v3560_v1, %v1179_v5 }
 0xc36   :  { %2532 = vmatmul.mubr.f32.vlgmr.msra.gmra.mxu1 %v1180_v6  ;;  %v1257_v62 = vsub.f32 1.0, %v1180_v6  ;;  %v1259_v35 = vmul.f32 %v1180_v6, %v3193_v39 }
 0xc37   :  { %2570 = vmatpush3.msra.mxu1 %v3489_v19  ;;  %2601 = vmatprep.mubr.msk.f32.mxu1 %vm3018_vm0, %v3017_v0 }
 0xc38   :  { %2571 = vmatprep.subr.mxu1 %v3017_v0 }
 0xc39   :  { %2572 = vmatpush3.msra.mxu1 %v3495_v20 }
 0xc3a   :  { %2573 = vmatprep.subr.mxu1 %v3017_v0 }
 0xc3b   :  { %2574 = vmatpush3.msra.mxu1 %v3499_v21 }
 0xc3c   :  { %2575 = vmatprep.subr.mxu1 %v3017_v0 }
 0xc3d   :  { %2576 = vmatpush3.msra.mxu1 %v3503_v17 }
 0xc3e   :  { %2577 = vmatprep.subr.mxu1 %v3017_v0 }
 0xc3f   :  { %2578 = vmatpush3.msra.mxu1 %v3507_v23 }
 0xc40   :  { %2579 = vmatprep.subr.mxu1 %v3017_v0 }
 0xc41   :  { %2580 = vmatpush3.msra.mxu1 %v3511_v24 }
 0xc42   :  { %2581 = vmatprep.subr.mxu1 %v3017_v0 }
 0xc43   :  { %2582 = vmatpush3.msra.mxu1 %v3515_v25 }
 0xc44   :  { %2583 = vmatprep.subr.mxu1 %v3017_v0 }
 0xc45   :  { %2584 = vmatpush3.msra.mxu1 %v3519_v26 }
 0xc46   :  { %2585 = vmatprep.subr.mxu1 %v3017_v0 }
 0xc47   :  { %2586 = vmatpush3.msra.mxu1 %v3523_v27 }
 0xc48   :  { %2587 = vmatprep.subr.mxu1 %v3017_v0 }
 0xc49   :  { %2588 = vmatpush3.msra.mxu1 %v3527_v28 }
 0xc4a   :  { %2589 = vmatprep.subr.mxu1 %v3017_v0 }
 0xc4b   :  { %2590 = vmatpush3.msra.mxu1 %v3531_v29 }
 0xc4c   :  { %2591 = vmatprep.subr.mxu1 %v3017_v0 }
 0xc4d   :  { %2592 = vmatpush3.msra.mxu1 %v3535_v30 }
 0xc4e   :  { %2593 = vmatprep.subr.mxu1 %v3017_v0 }
 0xc4f   :  { %2594 = vmatpush3.msra.mxu1 %v3539_v31 }
 0xc50   :  { %2595 = vmatprep.subr.mxu1 %v3017_v0 }
 0xc51   :  { %2596 = vmatpush3.msra.mxu1 %v3543_v32 }
 0xc52   :  { %2597 = vmatprep.subr.mxu1 %v3017_v0 }
 0xc53   :  { %2598 = vmatpush3.msra.mxu1 %v3547_v33 }
 0xc54   :  { %2599 = vmatprep.subr.mxu1 %v3017_v0 }
 0xc55   :  { %2600 = vmatpush3.msra.mxu1 %v3551_v34 }
 0xc56   :  { %2639 = vmatprep.subr.mxu1 %v3017_v0 }
 0xcf6   :  { %v1247_v7 = vpop.f32.mrf.mxu1 }
 0xcf7   :  { %v1248_v8 = vadd.f32 %v1247_v7, %v3189_v22 }
 0xcf8   :  { %v2533_v9 = vpop.f32.mrf.mxu1 }
 0xcf9   :  { %v1715_v10 = vclamps-f32 %v1248_v8, 0.5 }
 0xcfb   :  { %v2815_v11 = vcvt.f32.s32 %v1715_v10  ;;  %v2813_v13 = vand.u32 2147483647, %v1715_v10  ;;  %v2818_v15 = vand.u32 2147483648, %v1715_v10 }
 0xcfd   :  { %v2816_v12 = vcvt.s32.f32 %v2815_v11  ;;  %vm2814_vm1 = vcmp.lt.f32.partialorder %v2813_v13, 8388608.0 }
 0xcff   :  { %v2817_v14 = vand.u32 2147483647, %v2816_v12 }
 0xd01   :  { %v2819_v16 = vor.u32 %v2818_v15, %v2817_v14 }
 0xd03   :  { %v2820_v59 = vsel %vm2814_vm1, %v2819_v16, %v1715_v10 }
 0xd04   :  { %v1254_v60 = vsub.f32 %v1715_v10, %v2820_v59 }
 0xd06   :  { %v1255_v61 = vmul.f32 6.2831855, %v1254_v60 }
 0xd08   :  { %2896 = vtanh.f32 %v1255_v61 }
 0xd15   :  { %v2897_v63 = vpop.eup %2896 }
 0xd16   :  { %v1258_v18 = vmul.f32 %v2897_v63, %v1257_v62 }
 0xd18   :  { %v1260_v36 = vmul.f32 %v1258_v18, %v3195_v40 }
 0xd1a   :  { %v1261_v37 = vadd.f32 %v1260_v36, %v1259_v35 }
 0xd1c   :  { %v1262_v38 = vmax.f32 %v1261_v37, 0.0 }
 0xd1e   :  { %v1263_v41 = vmin.f32 %v1262_v38, 1.0 }
 0xd20   :  { %v1264_v42 = vsel %vm76_vm3, %v3560_v1, %v1263_v41 }
 0xd21   :  { %2567 = vmatmul.mubr.f32.vlgmr.msra.gmra.mxu0 %v1264_v42  ;;  %v1341_v57 = vsub.f32 1.0, %v1264_v42  ;;  %v1343_v3 = vmul.f32 %v1264_v42, %v3193_v39 }
 0xd22   :  { %2605 = vmatpush3.msra.mxu0 %v3489_v19  ;;  %2636 = vmatprep.mubr.msk.f32.mxu0 %vm3018_vm0, %v3017_v0 }
 0xd23   :  { %2606 = vmatprep.subr.mxu0 %v3017_v0 }
 0xd24   :  { %2607 = vmatpush3.msra.mxu0 %v3495_v20 }
 0xd25   :  { %2608 = vmatprep.subr.mxu0 %v3017_v0 }
 0xd26   :  { %2609 = vmatpush3.msra.mxu0 %v3499_v21 }
 0xd27   :  { %2610 = vmatprep.subr.mxu0 %v3017_v0 }
 0xd28   :  { %2611 = vmatpush3.msra.mxu0 %v3503_v17 }
 0xd29   :  { %2612 = vmatprep.subr.mxu0 %v3017_v0 }
 0xd2a   :  { %2613 = vmatpush3.msra.mxu0 %v3507_v23 }
 0xd2b   :  { %2614 = vmatprep.subr.mxu0 %v3017_v0 }
 0xd2c   :  { %2615 = vmatpush3.msra.mxu0 %v3511_v24 }
 0xd2d   :  { %2616 = vmatprep.subr.mxu0 %v3017_v0 }
 0xd2e   :  { %2617 = vmatpush3.msra.mxu0 %v3515_v25 }
 0xd2f   :  { %2618 = vmatprep.subr.mxu0 %v3017_v0 }
 0xd30   :  { %2619 = vmatpush3.msra.mxu0 %v3519_v26 }
 0xd31   :  { %2620 = vmatprep.subr.mxu0 %v3017_v0 }
 0xd32   :  { %2621 = vmatpush3.msra.mxu0 %v3523_v27 }
 0xd33   :  { %2622 = vmatprep.subr.mxu0 %v3017_v0 }
 0xd34   :  { %2623 = vmatpush3.msra.mxu0 %v3527_v28 }
 0xd35   :  { %2624 = vmatprep.subr.mxu0 %v3017_v0 }
 0xd36   :  { %2625 = vmatpush3.msra.mxu0 %v3531_v29 }
 0xd37   :  { %2626 = vmatprep.subr.mxu0 %v3017_v0 }
 0xd38   :  { %2627 = vmatpush3.msra.mxu0 %v3535_v30 }
 0xd39   :  { %2628 = vmatprep.subr.mxu0 %v3017_v0 }
 0xd3a   :  { %2629 = vmatpush3.msra.mxu0 %v3539_v31 }
 0xd3b   :  { %2630 = vmatprep.subr.mxu0 %v3017_v0 }
 0xd3c   :  { %2631 = vmatpush3.msra.mxu0 %v3543_v32 }
 0xd3d   :  { %2632 = vmatprep.subr.mxu0 %v3017_v0 }
 0xd3e   :  { %2633 = vmatpush3.msra.mxu0 %v3547_v33 }
 0xd3f   :  { %2634 = vmatprep.subr.mxu0 %v3017_v0 }
 0xd40   :  { %2635 = vmatpush3.msra.mxu0 %v3551_v34 }
 0xd41   :  { %2674 = vmatprep.subr.mxu0 %v3017_v0 }
 0xde1   :  { %v1331_v43 = vpop.f32.mrf.mxu0 }
 0xde2   :  { %v1332_v44 = vadd.f32 %v1331_v43, %v3189_v22 }
 0xde3   :  { %v2568_v45 = vpop.f32.mrf.mxu0 }
 0xde4   :  { %v1716_v46 = vclamps-f32 %v1332_v44, 0.5 }
 0xde6   :  { %v2823_v47 = vcvt.f32.s32 %v1716_v46  ;;  %v2821_v50 = vand.u32 2147483647, %v1716_v46  ;;  %v2826_v52 = vand.u32 2147483648, %v1716_v46 }
 0xde8   :  { %v2824_v49 = vcvt.s32.f32 %v2823_v47  ;;  %vm2822_vm2 = vcmp.lt.f32.partialorder %v2821_v50, 8388608.0 }
 0xdea   :  { %v2825_v51 = vand.u32 2147483647, %v2824_v49 }
 0xdec   :  { %v2827_v53 = vor.u32 %v2826_v52, %v2825_v51 }
 0xdee   :  { %v2828_v54 = vsel %vm2822_vm2, %v2827_v53, %v1716_v46 }
 0xdef   :  { %v1338_v55 = vsub.f32 %v1716_v46, %v2828_v54 }
 0xdf1   :  { %v1339_v56 = vmul.f32 6.2831855, %v1338_v55 }
 0xdf3   :  { %2898 = vtanh.f32 %v1339_v56 }
 0xe00   :  { %v2899_v58 = vpop.eup %2898 }
 0xe01   :  { %v1342_v2 = vmul.f32 %v2899_v58, %v1341_v57 }
 0xe03   :  { %v1344_v4 = vmul.f32 %v1342_v2, %v3195_v40 }
 0xe05   :  { %v1345_v5 = vadd.f32 %v1344_v4, %v1343_v3 }
 0xe07   :  { %v1346_v6 = vmax.f32 %v1345_v5, 0.0 }
 0xe09   :  { %v1347_v7 = vmin.f32 %v1346_v6, 1.0 }
 0xe0b   :  { %v1348_v8 = vsel %vm76_vm3, %v3560_v1, %v1347_v7 }
 0xe0c   :  { %2602 = vmatmul.mubr.f32.vlgmr.msra.gmra.mxu1 %v1348_v8  ;;  %v1425_v18 = vsub.f32 1.0, %v1348_v8  ;;  %v1427_v37 = vmul.f32 %v1348_v8, %v3193_v39 }
 0xe0d   :  { %2640 = vmatpush3.msra.mxu1 %v3489_v19  ;;  %2671 = vmatprep.mubr.msk.f32.mxu1 %vm3018_vm0, %v3017_v0 }
 0xe0e   :  { %2641 = vmatprep.subr.mxu1 %v3017_v0 }
 0xe0f   :  { %2642 = vmatpush3.msra.mxu1 %v3495_v20 }
 0xe10   :  { %2643 = vmatprep.subr.mxu1 %v3017_v0 }
 0xe11   :  { %2644 = vmatpush3.msra.mxu1 %v3499_v21 }
 0xe12   :  { %2645 = vmatprep.subr.mxu1 %v3017_v0 }
 0xe13   :  { %2646 = vmatpush3.msra.mxu1 %v3503_v17 }
 0xe14   :  { %2647 = vmatprep.subr.mxu1 %v3017_v0 }
 0xe15   :  { %2648 = vmatpush3.msra.mxu1 %v3507_v23 }
 0xe16   :  { %2649 = vmatprep.subr.mxu1 %v3017_v0 }
 0xe17   :  { %2650 = vmatpush3.msra.mxu1 %v3511_v24 }
 0xe18   :  { %2651 = vmatprep.subr.mxu1 %v3017_v0 }
 0xe19   :  { %2652 = vmatpush3.msra.mxu1 %v3515_v25 }
 0xe1a   :  { %2653 = vmatprep.subr.mxu1 %v3017_v0 }
 0xe1b   :  { %2654 = vmatpush3.msra.mxu1 %v3519_v26 }
 0xe1c   :  { %2655 = vmatprep.subr.mxu1 %v3017_v0 }
 0xe1d   :  { %2656 = vmatpush3.msra.mxu1 %v3523_v27 }
 0xe1e   :  { %2657 = vmatprep.subr.mxu1 %v3017_v0 }
 0xe1f   :  { %2658 = vmatpush3.msra.mxu1 %v3527_v28 }
 0xe20   :  { %2659 = vmatprep.subr.mxu1 %v3017_v0 }
 0xe21   :  { %2660 = vmatpush3.msra.mxu1 %v3531_v29 }
 0xe22   :  { %2661 = vmatprep.subr.mxu1 %v3017_v0 }
 0xe23   :  { %2662 = vmatpush3.msra.mxu1 %v3535_v30 }
 0xe24   :  { %2663 = vmatprep.subr.mxu1 %v3017_v0 }
 0xe25   :  { %2664 = vmatpush3.msra.mxu1 %v3539_v31 }
 0xe26   :  { %2665 = vmatprep.subr.mxu1 %v3017_v0 }
 0xe27   :  { %2666 = vmatpush3.msra.mxu1 %v3543_v32 }
 0xe28   :  { %2667 = vmatprep.subr.mxu1 %v3017_v0 }
 0xe29   :  { %2668 = vmatpush3.msra.mxu1 %v3547_v33 }
 0xe2a   :  { %2669 = vmatprep.subr.mxu1 %v3017_v0 }
 0xe2b   :  { %2670 = vmatpush3.msra.mxu1 %v3551_v34 }
 0xecc   :  { %v1415_v9 = vpop.f32.mrf.mxu1 }
 0xecd   :  { %v1416_v10 = vadd.f32 %v1415_v9, %v3189_v22 }
 0xece   :  { %v2603_v11 = vpop.f32.mrf.mxu1 }
 0xecf   :  { %v1717_v12 = vclamps-f32 %v1416_v10, 0.5 }
 0xed1   :  { %v2831_v13 = vcvt.f32.s32 %v1717_v12  ;;  %v2829_v15 = vand.u32 2147483647, %v1717_v12  ;;  %v2834_v59 = vand.u32 2147483648, %v1717_v12 }
 0xed3   :  { %v2832_v14 = vcvt.s32.f32 %v2831_v13  ;;  %vm2830_vm4 = vcmp.lt.f32.partialorder %v2829_v15, 8388608.0 }
 0xed5   :  { %v2833_v16 = vand.u32 2147483647, %v2832_v14 }
 0xed7   :  { %v2835_v60 = vor.u32 %v2834_v59, %v2833_v16 }
 0xed9   :  { %v2836_v61 = vsel %vm2830_vm4, %v2835_v60, %v1717_v12 }
 0xeda   :  { %v1422_v62 = vsub.f32 %v1717_v12, %v2836_v61 }
 0xedc   :  { %v1423_v63 = vmul.f32 6.2831855, %v1422_v62 }
 0xede   :  { %2900 = vtanh.f32 %v1423_v63 }
 0xeeb   :  { %v2901_v35 = vpop.eup %2900 }
 0xeec   :  { %v1426_v36 = vmul.f32 %v2901_v35, %v1425_v18 }
 0xeee   :  { %v1428_v38 = vmul.f32 %v1426_v36, %v3195_v40 }
 0xef0   :  { %v1429_v41 = vadd.f32 %v1428_v38, %v1427_v37 }
 0xef2   :  { %v1430_v42 = vmax.f32 %v1429_v41, 0.0 }
 0xef4   :  { %v1431_v43 = vmin.f32 %v1430_v42, 1.0 }
 0xef6   :  { %v1432_v44 = vsel %vm76_vm3, %v3560_v1, %v1431_v43 }
 0xef7   :  { %2637 = vmatmul.mubr.f32.vlgmr.msra.gmra.mxu0 %v1432_v44 }
 0xef8   :  { %2675 = vmatpush3.msra.mxu0 %v3489_v19  ;;  %2706 = vmatprep.mubr.msk.f32.mxu0 %vm3018_vm0, %v3017_v0 }
 0xef9   :  { %2676 = vmatprep.subr.mxu0 %v3017_v0 }
 0xefa   :  { %2677 = vmatpush3.msra.mxu0 %v3495_v20 }
 0xefb   :  { %2678 = vmatprep.subr.mxu0 %v3017_v0 }
 0xefc   :  { %2679 = vmatpush3.msra.mxu0 %v3499_v21 }
 0xefd   :  { %2680 = vmatprep.subr.mxu0 %v3017_v0 }
 0xefe   :  { %2681 = vmatpush3.msra.mxu0 %v3503_v17 }
 0xeff   :  { %2682 = vmatprep.subr.mxu0 %v3017_v0 }
 0xf00   :  { %2683 = vmatpush3.msra.mxu0 %v3507_v23 }
 0xf01   :  { %2684 = vmatprep.subr.mxu0 %v3017_v0 }
 0xf02   :  { %2685 = vmatpush3.msra.mxu0 %v3511_v24 }
 0xf03   :  { %2686 = vmatprep.subr.mxu0 %v3017_v0 }
 0xf04   :  { %2687 = vmatpush3.msra.mxu0 %v3515_v25 }
 0xf05   :  { %2688 = vmatprep.subr.mxu0 %v3017_v0 }
 0xf06   :  { %2689 = vmatpush3.msra.mxu0 %v3519_v26 }
 0xf07   :  { %2690 = vmatprep.subr.mxu0 %v3017_v0 }
 0xf08   :  { %2691 = vmatpush3.msra.mxu0 %v3523_v27 }
 0xf09   :  { %2692 = vmatprep.subr.mxu0 %v3017_v0 }
 0xf0a   :  { %2693 = vmatpush3.msra.mxu0 %v3527_v28 }
 0xf0b   :  { %2694 = vmatprep.subr.mxu0 %v3017_v0 }
 0xf0c   :  { %2695 = vmatpush3.msra.mxu0 %v3531_v29 }
 0xf0d   :  { %2696 = vmatprep.subr.mxu0 %v3017_v0 }
 0xf0e   :  { %2697 = vmatpush3.msra.mxu0 %v3535_v30 }
 0xf0f   :  { %2698 = vmatprep.subr.mxu0 %v3017_v0 }
 0xf10   :  { %2699 = vmatpush3.msra.mxu0 %v3539_v31 }
 0xf11   :  { %2700 = vmatprep.subr.mxu0 %v3017_v0 }
 0xf12   :  { %2701 = vmatpush3.msra.mxu0 %v3543_v32  ;;  %v1509_v32 = vsub.f32 1.0, %v1432_v44 }
 0xf13   :  { %2702 = vmatprep.subr.mxu0 %v3017_v0 }
 0xf14   :  { %2703 = vmatpush3.msra.mxu0 %v3547_v33 }
 0xf15   :  { %2704 = vmatprep.subr.mxu0 %v3017_v0 }
 0xf16   :  { %2705 = vmatpush3.msra.mxu0 %v3551_v34  ;;  %v1511_v34 = vmul.f32 %v1432_v44, %v3193_v39 }
 0xfb7   :  { %v1499_v19 = vpop.f32.mrf.mxu0 }
 0xfb8   :  { %v1500_v20 = vadd.f32 %v1499_v19, %v3189_v22 }
 0xfb9   :  { %v2638_v21 = vpop.f32.mrf.mxu0 }
 0xfba   :  { %v1718_v17 = vclamps-f32 %v1500_v20, 0.5 }
 0xfbc   :  { %v2839_v23 = vcvt.f32.s32 %v1718_v17  ;;  %v2837_v25 = vand.u32 2147483647, %v1718_v17  ;;  %v2842_v27 = vand.u32 2147483648, %v1718_v17 }
 0xfbe   :  { %v2840_v24 = vcvt.s32.f32 %v2839_v23  ;;  %vm2838_vm0 = vcmp.lt.f32.partialorder %v2837_v25, 8388608.0  ;;  %v2925_v23 = vld [vmem:[#allocation2] sm:$0xff] }
 0xfc0   :  { %v2841_v26 = vand.u32 2147483647, %v2840_v24 }
 0xfc2   :  { %v2843_v28 = vor.u32 %v2842_v27, %v2841_v26 }
 0xfc4   :  { %v2844_v29 = vsel %vm2838_vm0, %v2843_v28, %v1718_v17 }
 0xfc5   :  { %v1506_v30 = vsub.f32 %v1718_v17, %v2844_v29 }
 0xfc7   :  { %v1507_v31 = vmul.f32 6.2831855, %v1506_v30 }
 0xfc9   :  { %2902 = vtanh.f32 %v1507_v31 }
 0xfd6   :  { %v2903_v0 = vpop.eup %2902 }
 0xfd7   :  { %v1510_v33 = vmul.f32 %v2903_v0, %v1509_v32 }
 0xfd9   :  { %v1512_v45 = vmul.f32 %v1510_v33, %v3195_v40 }
 0xfdb   :  { %v1513_v46 = vadd.f32 %v1512_v45, %v1511_v34 }
 0xfdd   :  { %v1514_v47 = vmax.f32 %v1513_v46, 0.0 }
 0xfdf   :  { %v1515_v49 = vmin.f32 %v1514_v47, 1.0 }
 0xfe1   :  { %v1516_v50 = vsel %vm76_vm3, %v3560_v1, %v1515_v49 }
 0xfe2   :  { %2672 = vmatmul.mubr.f32.vlgmr.msra.gmra.mxu1 %v1516_v50  ;;  %v1593_v7 = vsub.f32 1.0, %v1516_v50  ;;  %v1595_v10 = vmul.f32 %v1516_v50, %v3193_v39 }
0x10a2   :  { %v1583_v51 = vpop.f32.mrf.mxu1 }
0x10a3   :  { %v1584_v52 = vadd.f32 %v1583_v51, %v3189_v22 }
0x10a4   :  { %v2673_v53 = vpop.f32.mrf.mxu1 }
0x10a5   :  { %v1719_v54 = vclamps-f32 %v1584_v52, 0.5 }
0x10a7   :  { %v2847_v55 = vcvt.f32.s32 %v1719_v54  ;;  %v2845_v57 = vand.u32 2147483647, %v1719_v54  ;;  %v2850_v2 = vand.u32 2147483648, %v1719_v54 }
0x10a9   :  { %v2848_v56 = vcvt.s32.f32 %v2847_v55  ;;  %vm2846_vm5 = vcmp.lt.f32.partialorder %v2845_v57, 8388608.0 }
0x10ab   :  { %v2849_v58 = vand.u32 2147483647, %v2848_v56 }
0x10ad   :  { %v2851_v3 = vor.u32 %v2850_v2, %v2849_v58 }
0x10af   :  { %v2852_v4 = vsel %vm2846_vm5, %v2851_v3, %v1719_v54 }
0x10b0   :  { %v1590_v5 = vsub.f32 %v1719_v54, %v2852_v4 }
0x10b2   :  { %v1591_v6 = vmul.f32 6.2831855, %v1590_v5 }
0x10b4   :  { %2904 = vtanh.f32 %v1591_v6 }
0x10c1   :  { %v2905_v8 = vpop.eup %2904 }
0x10c2   :  { %v1594_v9 = vmul.f32 %v2905_v8, %v1593_v7 }
0x10c4   :  { %v1596_v11 = vmul.f32 %v1594_v9, %v3195_v40 }
0x10c6   :  { %v1597_v12 = vadd.f32 %v1596_v11, %v1595_v10 }
0x10c8   :  { %v1598_v13 = vmax.f32 %v1597_v12, 0.0 }
0x10ca   :  { %v1599_v14 = vmin.f32 %v1598_v13, 1.0 }
0x10cc   :  { %v1600_v15 = vsel %vm76_vm3, %v3560_v1, %v1599_v14 }
0x10cd   :  { %2707 = vmatmul.mubr.f32.vlgmr.msra.gmra.mxu0 %v1600_v15  ;;  %v1677_v43 = vsub.f32 1.0, %v1600_v15  ;;  %v1679_v19 = vmul.f32 %v1600_v15, %v3193_v39 }
0x118d   :  { %v1667_v16 = vpop.f32.mrf.mxu0 }
0x118e   :  { %v1668_v59 = vadd.f32 %v1667_v16, %v3189_v22 }
0x118f   :  { %v2708_v60 = vpop.f32.mrf.mxu0 }
0x1190   :  { %v1720_v61 = vclamps-f32 %v1668_v59, 0.5 }
0x1192   :  { %v2855_v62 = vcvt.f32.s32 %v1720_v61  ;;  %v2853_v18 = vand.u32 2147483647, %v1720_v61  ;;  %v2858_v36 = vand.u32 2147483648, %v1720_v61 }
0x1194   :  { %v2856_v63 = vcvt.s32.f32 %v2855_v62  ;;  %vm2854_vm6 = vcmp.lt.f32.partialorder %v2853_v18, 8388608.0 }
0x1196   :  { %v2857_v35 = vand.u32 2147483647, %v2856_v63 }
0x1198   :  { %v2859_v37 = vor.u32 %v2858_v36, %v2857_v35 }
0x119a   :  { %v2860_v38 = vsel %vm2854_vm6, %v2859_v37, %v1720_v61 }
0x119b   :  { %v1674_v41 = vsub.f32 %v1720_v61, %v2860_v38 }
0x119d   :  { %v1675_v42 = vmul.f32 6.2831855, %v1674_v41 }
0x119f   :  { %2906 = vtanh.f32 %v1675_v42 }
0x11ac   :  { %v2907_v44 = vpop.eup %2906 }
0x11ad   :  { %v1678_v1 = vmul.f32 %v2907_v44, %v1677_v43 }
0x11af   :  { %v1680_v22 = vmul.f32 %v1678_v1, %v3195_v40 }
0x11b1   :  { %v1681_v20 = vadd.f32 %v1680_v22, %v1679_v19 }
0x11b3   :  { %v1682_v21 = vmax.f32 %v1681_v20, 0.0 }
0x11b5   :  { %v1683_v17 = vmin.f32 %v1682_v21, 1.0 }
0x11b7   :  { %v1684_v24 = vsel %vm76_vm3, %v2925_v23, %v1683_v17 }
0x11b8   :  { %1685 = vst [vmem:[#allocation8] sm:$0xff] %v1684_v24 }
0x11b9   :  { %2997 = shalt.err (!%p2994_p5)
}
0x11ba   :  { %1695 = dma.vmem_to_hbm [thread:$0]  %s1693_s2, 128, %s3900_s3, [#allocation4]  }
0x11bb   :  { %3010 = dma.done.wait [#allocation4], 128  }
0x11bc   :  { %3011 = vsyncadd [#allocation4], 4294967168 }
0x11bd   :  { %1699 = vsyncpa [#allocation3], 1 }
0x11be   :  { %1700 = vsyncpa [#allocation6], 1 }
0x11bf   :  { %1701 = vsyncpa [#allocation4], 1 }

</bundles_post_ra>
